<compile_context>
chip_gen: v7x
topology: tpu7x:2x2x1
jax: 0.10.0
libtpu: 0.0.40
codegen_flags: <defaults>
</compile_context>

<pallas_src>
import functools

import numpy as np

import jax
import jax.numpy as jnp
from jax import lax
from jax.experimental import pallas as pl
from jax.experimental.pallas import tpu as pltpu


def _fused_downstep_kernel(x_ref, w1_ref, b1_ref, w2_ref, b2_ref,
                           masks_ref, selc_ref, down_ref, pool_ref, y1p_ref,
                           *, H, W, nb, A0):
    """Fused conv3x3+ReLU -> conv3x3+ReLU -> 2x2 maxpool for nb images.

    Flat layout: an image is a (C, Lp2) slab whose lane A0 + r*W + c holds
    pixel (r, c) (A0 is a multiple of 128; a few guard lanes surround the
    interior so every 3x3 tap window is a plain contiguous lane slice).
    Out-of-image taps are removed with boolean border masks (select), so the
    guard lanes' contents never matter and the scratch is never initialized.
    """
    Np = H * W
    Ho, Wo = H // 2, W // 2

    m = masks_ref[...]
    mT = m[0:1, :] > 0.5      # output row 0   -> kh == 0 taps read above image
    mB = m[1:2, :] > 0.5      # output row H-1 -> kh == 2 taps read below image
    mL = m[2:3, :] > 0.5      # output col 0   -> kw == 0 taps wrap to prev row
    mR = m[3:4, :] > 0.5      # output col W-1 -> kw == 2 taps wrap to next row
    row_m = (mT, None, mB)
    col_m = (mL, None, mR)

    def tap(img, kh, kw):
        # (C, Np) im2col window of one image for tap (kh, kw); border lanes
        # are selected to 0 (select, NOT multiply: masked-off lanes may hold
        # uninitialized scratch bits and 0 * NaN would poison the matmul).
        s = A0 + (kh - 1) * W + (kw - 1)
        v = img[:, s:s + Np]
        rm, cm = row_m[kh], col_m[kw]
        msk = rm if cm is None else (cm if rm is None else rm & cm)
        if msk is not None:
            v = jnp.where(msk, v, 0)
        return v

    def conv3x3(src_ref, w_ref, b_ref):
        # 3 accumulated (Cout, 3C) @ (3C, nb*Np) bf16 MXU matmuls (one per kh
        # tap row) -> caps the im2col transient at 3x the activation.
        imgs = [src_ref[n] for n in range(nb)]            # (C, Lp2) values
        acc = None
        for kh in range(3):
            slab = jnp.concatenate(
                [jnp.concatenate([tap(imgs[n], kh, kw) for n in range(nb)],
                                 axis=1)
                 for kw in range(3)], axis=0)             # (3C, nb*Np) bf16
            part = jnp.dot(w_ref[kh], slab,
                           preferred_element_type=jnp.float32)
            acc = part if acc is None else acc + part
        return jnp.maximum(acc + b_ref[...], 0.0)         # (Cout, nb*Np) f32

    # ---- conv1 + ReLU -> bf16, parked in the VMEM scratch (never hits HBM).
    # The interior store starts at lane A0 (multiple of 128) and is Np wide.
    y1 = conv3x3(x_ref, w1_ref, b1_ref)
    for n in range(nb):
        y1p_ref[n, :, A0:A0 + Np] = (
            y1[:, n * Np:(n + 1) * Np].astype(y1p_ref.dtype))

    # ---- conv2 + ReLU (reads the scratch through the same masked-tap path).
    y2 = conv3x3(y1p_ref, w2_ref, b2_ref)                 # (Cout, nb*Np) f32

    # ---- x_down: lane q = r*W + c IS pixel (r, c) -> no halo junk to strip.
    for n in range(nb):
        down_ref[n] = y2[:, n * Np:(n + 1) * Np].astype(down_ref.dtype)

    # ---- 2x2 / stride-2 max pool: per output row, shifted self-max plus a
    # tiny (W-1, Wo) 0/1 even-column selection matmul (O(W*Wo) constants).
    selc = selc_ref[...]
    for n in range(nb):
        rows = []
        for i in range(Ho):
            s = n * Np + 2 * i * W
            rmax = jnp.maximum(y2[:, s:s + W], y2[:, s + W:s + 2 * W])
            cmax = jnp.maximum(rmax[:, :W - 1], rmax[:, 1:])
            rows.append(jnp.dot(cmax, selc,
                                preferred_element_type=jnp.float32))
        # TODO(synk): Ho*Wo < 128 at toy sizes makes this a lane-masked store;
        # irrelevant once the spatial size grows past 128 output lanes.
        pool_ref[n] = jnp.concatenate(rows, axis=1).astype(pool_ref.dtype)


def _round_up(v, m):
    return ((v + m - 1) // m) * m


def down_step(x_nchw, w1_oihw, b1, w2_oihw, b2, *, images_per_step=None):
    """Forward pass of downStep.  NCHW in/out.  Returns (x_pool, x_down)."""
    N, Cin, H, W = x_nchw.shape
    Cout = w1_oihw.shape[0]
    assert H % 2 == 0 and W % 2 == 0, "maxpool 2x2 needs even H, W"

    Np = H * W
    Ho, Wo = H // 2, W // 2
    Cin_p = _round_up(Cin, 16)           # bf16 sublane packing
    Cout_p = _round_up(Cout, 16)
    A0 = _round_up(W + 1, 128)           # 128-aligned interior lane offset
    Lp2 = A0 + Np + W + 1                # + guard lanes for the tap windows
    dtype = x_nchw.dtype

    # Images per grid step: batch lanes to amortize per-step overhead, but
    # keep >= 2 'parallel' grid steps so v7x's two TensorCores both get work.
    if images_per_step is None:
        nb = 1
        for cand in range(min(8, N // 2), 0, -1):
            if N % cand == 0:
                nb = cand
                break
    else:
        nb = int(images_per_step)
        assert N % nb == 0
    grid = (N // nb,)

    # One fused pass over the (small) raw input: channel pad, place the flat
    # (C, H*W) rows at lane offset A0, cast to bf16.
    xf = jnp.pad(x_nchw.reshape(N, Cin, Np),
                 ((0, 0), (0, Cin_p - Cin), (A0, Lp2 - A0 - Np)))
    xf = xf.astype(jnp.bfloat16)

    # Weights -> (3, Cout_p, 3*C) bf16, K ordered (kw, cin); biases f32.
    def prep_w(w, cin, cin_p):
        wm = jnp.transpose(w, (2, 0, 3, 1))               # (kh, O, kw, I)
        wm = jnp.pad(wm, ((0, 0), (0, Cout_p - Cout),
                          (0, 0), (0, cin_p - cin)))
        return wm.reshape(3, Cout_p, 3 * cin_p).astype(jnp.bfloat16)

    w1m = prep_w(w1_oihw, Cin, Cin_p)
    w2m = prep_w(w2_oihw, Cout, Cout_p)
    b1m = jnp.pad(b1, (0, Cout_p - Cout)).reshape(Cout_p, 1).astype(jnp.float32)
    b2m = jnp.pad(b2, (0, Cout_p - Cout)).reshape(Cout_p, 1).astype(jnp.float32)

    # Tiny static helpers (XLA constants under jit): border masks + the
    # factored even-column pool selector.
    q = np.arange(Np)
    masks = np.stack([q >= W,                 # kh == 0 taps invalid at row 0
                      q < (H - 1) * W,        # kh == 2 taps invalid at row H-1
                      q % W != 0,             # kw == 0 taps invalid at col 0
                      q % W != W - 1],        # kw == 2 taps invalid at col W-1
                     axis=0).astype(np.float32)
    selc = np.zeros((W - 1, Wo), np.float32)
    selc[2 * np.arange(Wo), np.arange(Wo)] = 1.0

    kernel = functools.partial(_fused_downstep_kernel, H=H, W=W, nb=nb, A0=A0)

    down_flat, pool_flat = pl.pallas_call(
        kernel,
        out_shape=(
            jax.ShapeDtypeStruct((N, Cout_p, Np), dtype),
            jax.ShapeDtypeStruct((N, Cout_p, Ho * Wo), dtype),
        ),
        grid=grid,
        in_specs=[
            pl.BlockSpec((nb, Cin_p, Lp2), lambda g: (g, 0, 0)),
            pl.BlockSpec((3, Cout_p, 3 * Cin_p), lambda g: (0, 0, 0)),
            pl.BlockSpec((Cout_p, 1), lambda g: (0, 0)),
            pl.BlockSpec((3, Cout_p, 3 * Cout_p), lambda g: (0, 0, 0)),
            pl.BlockSpec((Cout_p, 1), lambda g: (0, 0)),
            pl.BlockSpec((4, Np), lambda g: (0, 0)),
            pl.BlockSpec((W - 1, Wo), lambda g: (0, 0)),
        ],
        out_specs=(
            pl.BlockSpec((nb, Cout_p, Np), lambda g: (g, 0, 0)),
            pl.BlockSpec((nb, Cout_p, Ho * Wo), lambda g: (g, 0, 0)),
        ),
        scratch_shapes=[pltpu.VMEM((nb, Cout_p, Lp2), jnp.bfloat16)],
        compiler_params=pltpu.CompilerParams(
            dimension_semantics=("parallel",)),
    )(xf, w1m, b1m, w2m, b2m, jnp.asarray(masks), jnp.asarray(selc))

    # Free metadata reshapes only — no halo strip, no extra HBM pass.
    x_down = down_flat.reshape(N, Cout_p, H, W)
    x_pool = pool_flat.reshape(N, Cout_p, Ho, Wo)
    if Cout_p != Cout:
        x_down = x_down[:, :Cout]
        x_pool = x_pool[:, :Cout]
    return x_pool, x_down


# -----------------------------------------------------------------------------
# Pure-JAX reference (for verification)
# -----------------------------------------------------------------------------
def down_step_ref(x_nchw, w1, b1, w2, b2):
    def conv(x, w, b):
        y = lax.conv_general_dilated(
            x, w, window_strides=(1, 1), padding=((1, 1), (1, 1)),
            dimension_numbers=("NCHW", "OIHW", "NCHW"),
            precision=lax.Precision.HIGHEST)
        return jnp.maximum(y + b[None, :, None, None], 0.0)

    a = conv(x_nchw, w1, b1)
    d = conv(a, w2, b2)
    n, c, h, w = d.shape
    p = d.reshape(n, c, h // 2, 2, w // 2, 2).max(axis=(3, 5))
    return p, d


# -----------------------------------------------------------------------------
if __name__ == "__main__":
    key = jax.random.PRNGKey(0)
    k1, k2, k3, k4, k5 = jax.random.split(key, 5)

    N, inC, outC, H, W = 2, 4, 16, 16, 16
    x = jax.random.normal(k1, (N, inC, H, W), jnp.float32)
    w1 = 0.1 * jax.random.normal(k2, (outC, inC, 3, 3), jnp.float32)
    b1 = 0.1 * jax.random.normal(k3, (outC,), jnp.float32)
    w2 = 0.1 * jax.random.normal(k4, (outC, outC, 3, 3), jnp.float32)
    b2 = 0.1 * jax.random.normal(k5, (outC,), jnp.float32)

    fwd = jax.jit(down_step)
    x_pool, x_down = jax.block_until_ready(fwd(x, w1, b1, w2, b2))

    r_pool, r_down = down_step_ref(x, w1, b1, w2, b2)
    assert x_pool.shape == (N, outC, H // 2, W // 2)
    assert x_down.shape == (N, outC, H, W)
    # bf16 MXU inputs with f32 accumulation -> slightly looser tolerance.
    assert jnp.allclose(x_down, r_down, atol=2e-2, rtol=2e-2), (
        float(jnp.max(jnp.abs(x_down - r_down))))
    assert jnp.allclose(x_pool, r_pool, atol=2e-2, rtol=2e-2), (
        float(jnp.max(jnp.abs(x_pool - r_pool))))

    print("KERNEL_OK")
</pallas_src>

<mosaic_0001>
module attributes {stable_mosaic.version = 11 : i64} {
  func.func @_fused_downstep_kernel(%arg0: i32, %arg1: memref<1x16x401xbf16, #tpu.memory_space<vmem>>, %arg2: memref<3x16x48xbf16, #tpu.memory_space<vmem>>, %arg3: memref<16x1xf32, #tpu.memory_space<vmem>>, %arg4: memref<3x16x48xbf16, #tpu.memory_space<vmem>>, %arg5: memref<16x1xf32, #tpu.memory_space<vmem>>, %arg6: memref<4x256xf32, #tpu.memory_space<vmem>>, %arg7: memref<15x8xf32, #tpu.memory_space<vmem>>, %arg8: memref<1x16x256xf32, #tpu.memory_space<vmem>>, %arg9: memref<1x16x64xf32, #tpu.memory_space<vmem>>, %arg10: memref<1x16x401xbf16, #tpu.memory_space<vmem>>) attributes {dimension_semantics = [#tpu.dimension_semantics<parallel>], iteration_bounds = array<i64: 2>, scalar_prefetch = 0 : i64, scratch_operands = 1 : i64, tpu.core_type = #tpu.core_type<tc>, window_params = [{transform_indices = @transform_0, window_bounds = array<i64: 1, 16, 401>}, {pipeline_mode = #tpu.pipeline_mode<synchronous>, transform_indices = @transform_1, window_bounds = array<i64: 3, 16, 48>}, {pipeline_mode = #tpu.pipeline_mode<synchronous>, transform_indices = @transform_2, window_bounds = array<i64: 16, 1>}, {pipeline_mode = #tpu.pipeline_mode<synchronous>, transform_indices = @transform_3, window_bounds = array<i64: 3, 16, 48>}, {pipeline_mode = #tpu.pipeline_mode<synchronous>, transform_indices = @transform_4, window_bounds = array<i64: 16, 1>}, {pipeline_mode = #tpu.pipeline_mode<synchronous>, transform_indices = @transform_5, window_bounds = array<i64: 4, 256>}, {pipeline_mode = #tpu.pipeline_mode<synchronous>, transform_indices = @transform_6, window_bounds = array<i64: 15, 8>}, {transform_indices = @transform_7, window_bounds = array<i64: 1, 16, 256>}, {transform_indices = @transform_8, window_bounds = array<i64: 1, 16, 64>}]} {
    %c0 = arith.constant 0 : index
    %c0_0 = arith.constant 0 : index
    %0 = vector.load %arg6[%c0, %c0_0] : memref<4x256xf32, #tpu.memory_space<vmem>>, vector<4x256xf32>
    %1 = vector.extract_strided_slice %0 {offsets = [0, 0], sizes = [1, 256], strides = [1, 1]} : vector<4x256xf32> to vector<1x256xf32>
    %cst = arith.constant 5.000000e-01 : f32
    %2 = vector.broadcast %cst : f32 to vector<1x256xf32>
    %3 = arith.cmpf ogt, %1, %2 : vector<1x256xf32>
    %4 = vector.extract_strided_slice %0 {offsets = [1, 0], sizes = [1, 256], strides = [1, 1]} : vector<4x256xf32> to vector<1x256xf32>
    %cst_1 = arith.constant 5.000000e-01 : f32
    %5 = vector.broadcast %cst_1 : f32 to vector<1x256xf32>
    %6 = arith.cmpf ogt, %4, %5 : vector<1x256xf32>
    %7 = vector.extract_strided_slice %0 {offsets = [2, 0], sizes = [1, 256], strides = [1, 1]} : vector<4x256xf32> to vector<1x256xf32>
    %cst_2 = arith.constant 5.000000e-01 : f32
    %8 = vector.broadcast %cst_2 : f32 to vector<1x256xf32>
    %9 = arith.cmpf ogt, %7, %8 : vector<1x256xf32>
    %10 = vector.extract_strided_slice %0 {offsets = [3, 0], sizes = [1, 256], strides = [1, 1]} : vector<4x256xf32> to vector<1x256xf32>
    %cst_3 = arith.constant 5.000000e-01 : f32
    %11 = vector.broadcast %cst_3 : f32 to vector<1x256xf32>
    %12 = arith.cmpf ogt, %10, %11 : vector<1x256xf32>
    %c0_4 = arith.constant 0 : index
    %c0_5 = arith.constant 0 : index
    %c0_6 = arith.constant 0 : index
    %13 = vector.load %arg1[%c0_4, %c0_5, %c0_6] : memref<1x16x401xbf16, #tpu.memory_space<vmem>>, vector<1x16x401xbf16>
    %14 = vector.shape_cast %13 : vector<1x16x401xbf16> to vector<16x401xbf16>
    %15 = vector.extract_strided_slice %14 {offsets = [0, 111], sizes = [16, 256], strides = [1, 1]} : vector<16x401xbf16> to vector<16x256xbf16>
    %16 = arith.andi %3, %9 : vector<1x256xi1>
    %c0_i32 = arith.constant 0 : i32
    %17 = arith.sitofp %c0_i32 : i32 to bf16
    %18 = vector.shape_cast %16 : vector<1x256xi1> to vector<1x256xi1>
    %19 = vector.broadcast %18 : vector<1x256xi1> to vector<16x256xi1>
    %20 = vector.broadcast %17 : bf16 to vector<16x256xbf16>
    %21 = arith.select %19, %15, %20 : vector<16x256xi1>, vector<16x256xbf16>
    %22 = vector.extract_strided_slice %14 {offsets = [0, 112], sizes = [16, 256], strides = [1, 1]} : vector<16x401xbf16> to vector<16x256xbf16>
    %c0_i32_7 = arith.constant 0 : i32
    %23 = arith.sitofp %c0_i32_7 : i32 to bf16
    %24 = vector.shape_cast %3 : vector<1x256xi1> to vector<1x256xi1>
    %25 = vector.broadcast %24 : vector<1x256xi1> to vector<16x256xi1>
    %26 = vector.broadcast %23 : bf16 to vector<16x256xbf16>
    %27 = arith.select %25, %22, %26 : vector<16x256xi1>, vector<16x256xbf16>
    %28 = vector.extract_strided_slice %14 {offsets = [0, 113], sizes = [16, 256], strides = [1, 1]} : vector<16x401xbf16> to vector<16x256xbf16>
    %29 = arith.andi %3, %12 : vector<1x256xi1>
    %c0_i32_8 = arith.constant 0 : i32
    %30 = arith.sitofp %c0_i32_8 : i32 to bf16
    %31 = vector.shape_cast %29 : vector<1x256xi1> to vector<1x256xi1>
    %32 = vector.broadcast %31 : vector<1x256xi1> to vector<16x256xi1>
    %33 = vector.broadcast %30 : bf16 to vector<16x256xbf16>
    %34 = arith.select %32, %28, %33 : vector<16x256xi1>, vector<16x256xbf16>
    %35 = tpu.concatenate %21, %27, %34 in 0 : vector<16x256xbf16>, vector<16x256xbf16>, vector<16x256xbf16> -> vector<48x256xbf16>
    %c0_9 = arith.constant 0 : index
    %c0_10 = arith.constant 0 : index
    %c0_11 = arith.constant 0 : index
    %36 = vector.load %arg2[%c0_9, %c0_10, %c0_11] : memref<3x16x48xbf16, #tpu.memory_space<vmem>>, vector<1x16x48xbf16>
    %37 = vector.shape_cast %36 : vector<1x16x48xbf16> to vector<16x48xbf16>
    %cst_12 = arith.constant dense<0.000000e+00> : vector<16x256xf32>
    %38 = tpu.matmul %37, %35, %cst_12 {dimension_numbers = #tpu.dot_dimension_numbers<[1], [0], [0], [1], [0, 0, 1, 1], [], []>} : vector<16x48xbf16>, vector<48x256xbf16>, vector<16x256xf32> -> vector<16x256xf32>
    %39 = vector.extract_strided_slice %14 {offsets = [0, 127], sizes = [16, 256], strides = [1, 1]} : vector<16x401xbf16> to vector<16x256xbf16>
    %c0_i32_13 = arith.constant 0 : i32
    %40 = arith.sitofp %c0_i32_13 : i32 to bf16
    %41 = vector.shape_cast %9 : vector<1x256xi1> to vector<1x256xi1>
    %42 = vector.broadcast %41 : vector<1x256xi1> to vector<16x256xi1>
    %43 = vector.broadcast %40 : bf16 to vector<16x256xbf16>
    %44 = arith.select %42, %39, %43 : vector<16x256xi1>, vector<16x256xbf16>
    %45 = vector.extract_strided_slice %14 {offsets = [0, 128], sizes = [16, 256], strides = [1, 1]} : vector<16x401xbf16> to vector<16x256xbf16>
    %46 = vector.extract_strided_slice %14 {offsets = [0, 129], sizes = [16, 256], strides = [1, 1]} : vector<16x401xbf16> to vector<16x256xbf16>
    %c0_i32_14 = arith.constant 0 : i32
    %47 = arith.sitofp %c0_i32_14 : i32 to bf16
    %48 = vector.shape_cast %12 : vector<1x256xi1> to vector<1x256xi1>
    %49 = vector.broadcast %48 : vector<1x256xi1> to vector<16x256xi1>
    %50 = vector.broadcast %47 : bf16 to vector<16x256xbf16>
    %51 = arith.select %49, %46, %50 : vector<16x256xi1>, vector<16x256xbf16>
    %52 = tpu.concatenate %44, %45, %51 in 0 : vector<16x256xbf16>, vector<16x256xbf16>, vector<16x256xbf16> -> vector<48x256xbf16>
    %c1 = arith.constant 1 : index
    %c0_15 = arith.constant 0 : index
    %c0_16 = arith.constant 0 : index
    %53 = vector.load %arg2[%c1, %c0_15, %c0_16] : memref<3x16x48xbf16, #tpu.memory_space<vmem>>, vector<1x16x48xbf16>
    %54 = vector.shape_cast %53 : vector<1x16x48xbf16> to vector<16x48xbf16>
    %cst_17 = arith.constant dense<0.000000e+00> : vector<16x256xf32>
    %55 = tpu.matmul %54, %52, %cst_17 {dimension_numbers = #tpu.dot_dimension_numbers<[1], [0], [0], [1], [0, 0, 1, 1], [], []>} : vector<16x48xbf16>, vector<48x256xbf16>, vector<16x256xf32> -> vector<16x256xf32>
    %56 = arith.addf %38, %55 : vector<16x256xf32>
    %57 = vector.extract_strided_slice %14 {offsets = [0, 143], sizes = [16, 256], strides = [1, 1]} : vector<16x401xbf16> to vector<16x256xbf16>
    %58 = arith.andi %6, %9 : vector<1x256xi1>
    %c0_i32_18 = arith.constant 0 : i32
    %59 = arith.sitofp %c0_i32_18 : i32 to bf16
    %60 = vector.shape_cast %58 : vector<1x256xi1> to vector<1x256xi1>
    %61 = vector.broadcast %60 : vector<1x256xi1> to vector<16x256xi1>
    %62 = vector.broadcast %59 : bf16 to vector<16x256xbf16>
    %63 = arith.select %61, %57, %62 : vector<16x256xi1>, vector<16x256xbf16>
    %64 = vector.extract_strided_slice %14 {offsets = [0, 144], sizes = [16, 256], strides = [1, 1]} : vector<16x401xbf16> to vector<16x256xbf16>
    %c0_i32_19 = arith.constant 0 : i32
    %65 = arith.sitofp %c0_i32_19 : i32 to bf16
    %66 = vector.shape_cast %6 : vector<1x256xi1> to vector<1x256xi1>
    %67 = vector.broadcast %66 : vector<1x256xi1> to vector<16x256xi1>
    %68 = vector.broadcast %65 : bf16 to vector<16x256xbf16>
    %69 = arith.select %67, %64, %68 : vector<16x256xi1>, vector<16x256xbf16>
    %70 = vector.extract_strided_slice %14 {offsets = [0, 145], sizes = [16, 256], strides = [1, 1]} : vector<16x401xbf16> to vector<16x256xbf16>
    %71 = arith.andi %6, %12 : vector<1x256xi1>
    %c0_i32_20 = arith.constant 0 : i32
    %72 = arith.sitofp %c0_i32_20 : i32 to bf16
    %73 = vector.shape_cast %71 : vector<1x256xi1> to vector<1x256xi1>
    %74 = vector.broadcast %73 : vector<1x256xi1> to vector<16x256xi1>
    %75 = vector.broadcast %72 : bf16 to vector<16x256xbf16>
    %76 = arith.select %74, %70, %75 : vector<16x256xi1>, vector<16x256xbf16>
    %77 = tpu.concatenate %63, %69, %76 in 0 : vector<16x256xbf16>, vector<16x256xbf16>, vector<16x256xbf16> -> vector<48x256xbf16>
    %c2 = arith.constant 2 : index
    %c0_21 = arith.constant 0 : index
    %c0_22 = arith.constant 0 : index
    %78 = vector.load %arg2[%c2, %c0_21, %c0_22] : memref<3x16x48xbf16, #tpu.memory_space<vmem>>, vector<1x16x48xbf16>
    %79 = vector.shape_cast %78 : vector<1x16x48xbf16> to vector<16x48xbf16>
    %cst_23 = arith.constant dense<0.000000e+00> : vector<16x256xf32>
    %80 = tpu.matmul %79, %77, %cst_23 {dimension_numbers = #tpu.dot_dimension_numbers<[1], [0], [0], [1], [0, 0, 1, 1], [], []>} : vector<16x48xbf16>, vector<48x256xbf16>, vector<16x256xf32> -> vector<16x256xf32>
    %81 = arith.addf %56, %80 : vector<16x256xf32>
    %c0_24 = arith.constant 0 : index
    %c0_25 = arith.constant 0 : index
    %82 = vector.load %arg3[%c0_24, %c0_25] : memref<16x1xf32, #tpu.memory_space<vmem>>, vector<16x1xf32>
    %83 = vector.broadcast %82 : vector<16x1xf32> to vector<16x256xf32>
    %84 = arith.addf %81, %83 : vector<16x256xf32>
    %cst_26 = arith.constant 0.000000e+00 : f32
    %85 = vector.broadcast %cst_26 : f32 to vector<16x256xf32>
    %86 = arith.maximumf %84, %85 : vector<16x256xf32>
    %87 = arith.truncf %86 : vector<16x256xf32> to vector<16x256xbf16>
    %c0_27 = arith.constant 0 : index
    %c0_28 = arith.constant 0 : index
    %c128 = arith.constant 128 : index
    %88 = vector.load %arg10[%c0_27, %c0_28, %c128] : memref<1x16x401xbf16, #tpu.memory_space<vmem>>, vector<1x16x256xbf16>
    %89 = vector.shape_cast %88 : vector<1x16x256xbf16> to vector<16x256xbf16>
    %90 = vector.shape_cast %87 : vector<16x256xbf16> to vector<1x16x256xbf16>
    tpu.vector_store %arg10[%c0_27, %c0_28, %c128], %90 {strides = array<i32>} : memref<1x16x401xbf16, #tpu.memory_space<vmem>>, vector<1x16x256xbf16>,
    %c0_29 = arith.constant 0 : index
    %c0_30 = arith.constant 0 : index
    %c0_31 = arith.constant 0 : index
    %91 = vector.load %arg10[%c0_29, %c0_30, %c0_31] : memref<1x16x401xbf16, #tpu.memory_space<vmem>>, vector<1x16x401xbf16>
    %92 = vector.shape_cast %91 : vector<1x16x401xbf16> to vector<16x401xbf16>
    %93 = vector.extract_strided_slice %92 {offsets = [0, 111], sizes = [16, 256], strides = [1, 1]} : vector<16x401xbf16> to vector<16x256xbf16>
    %94 = arith.andi %3, %9 : vector<1x256xi1>
    %c0_i32_32 = arith.constant 0 : i32
    %95 = arith.sitofp %c0_i32_32 : i32 to bf16
    %96 = vector.shape_cast %94 : vector<1x256xi1> to vector<1x256xi1>
    %97 = vector.broadcast %96 : vector<1x256xi1> to vector<16x256xi1>
    %98 = vector.broadcast %95 : bf16 to vector<16x256xbf16>
    %99 = arith.select %97, %93, %98 : vector<16x256xi1>, vector<16x256xbf16>
    %100 = vector.extract_strided_slice %92 {offsets = [0, 112], sizes = [16, 256], strides = [1, 1]} : vector<16x401xbf16> to vector<16x256xbf16>
    %c0_i32_33 = arith.constant 0 : i32
    %101 = arith.sitofp %c0_i32_33 : i32 to bf16
    %102 = vector.shape_cast %3 : vector<1x256xi1> to vector<1x256xi1>
    %103 = vector.broadcast %102 : vector<1x256xi1> to vector<16x256xi1>
    %104 = vector.broadcast %101 : bf16 to vector<16x256xbf16>
    %105 = arith.select %103, %100, %104 : vector<16x256xi1>, vector<16x256xbf16>
    %106 = vector.extract_strided_slice %92 {offsets = [0, 113], sizes = [16, 256], strides = [1, 1]} : vector<16x401xbf16> to vector<16x256xbf16>
    %107 = arith.andi %3, %12 : vector<1x256xi1>
    %c0_i32_34 = arith.constant 0 : i32
    %108 = arith.sitofp %c0_i32_34 : i32 to bf16
    %109 = vector.shape_cast %107 : vector<1x256xi1> to vector<1x256xi1>
    %110 = vector.broadcast %109 : vector<1x256xi1> to vector<16x256xi1>
    %111 = vector.broadcast %108 : bf16 to vector<16x256xbf16>
    %112 = arith.select %110, %106, %111 : vector<16x256xi1>, vector<16x256xbf16>
    %113 = tpu.concatenate %99, %105, %112 in 0 : vector<16x256xbf16>, vector<16x256xbf16>, vector<16x256xbf16> -> vector<48x256xbf16>
    %c0_35 = arith.constant 0 : index
    %c0_36 = arith.constant 0 : index
    %c0_37 = arith.constant 0 : index
    %114 = vector.load %arg4[%c0_35, %c0_36, %c0_37] : memref<3x16x48xbf16, #tpu.memory_space<vmem>>, vector<1x16x48xbf16>
    %115 = vector.shape_cast %114 : vector<1x16x48xbf16> to vector<16x48xbf16>
    %cst_38 = arith.constant dense<0.000000e+00> : vector<16x256xf32>
    %116 = tpu.matmul %115, %113, %cst_38 {dimension_numbers = #tpu.dot_dimension_numbers<[1], [0], [0], [1], [0, 0, 1, 1], [], []>} : vector<16x48xbf16>, vector<48x256xbf16>, vector<16x256xf32> -> vector<16x256xf32>
    %117 = vector.extract_strided_slice %92 {offsets = [0, 127], sizes = [16, 256], strides = [1, 1]} : vector<16x401xbf16> to vector<16x256xbf16>
    %c0_i32_39 = arith.constant 0 : i32
    %118 = arith.sitofp %c0_i32_39 : i32 to bf16
    %119 = vector.shape_cast %9 : vector<1x256xi1> to vector<1x256xi1>
    %120 = vector.broadcast %119 : vector<1x256xi1> to vector<16x256xi1>
    %121 = vector.broadcast %118 : bf16 to vector<16x256xbf16>
    %122 = arith.select %120, %117, %121 : vector<16x256xi1>, vector<16x256xbf16>
    %123 = vector.extract_strided_slice %92 {offsets = [0, 128], sizes = [16, 256], strides = [1, 1]} : vector<16x401xbf16> to vector<16x256xbf16>
    %124 = vector.extract_strided_slice %92 {offsets = [0, 129], sizes = [16, 256], strides = [1, 1]} : vector<16x401xbf16> to vector<16x256xbf16>
    %c0_i32_40 = arith.constant 0 : i32
    %125 = arith.sitofp %c0_i32_40 : i32 to bf16
    %126 = vector.shape_cast %12 : vector<1x256xi1> to vector<1x256xi1>
    %127 = vector.broadcast %126 : vector<1x256xi1> to vector<16x256xi1>
    %128 = vector.broadcast %125 : bf16 to vector<16x256xbf16>
    %129 = arith.select %127, %124, %128 : vector<16x256xi1>, vector<16x256xbf16>
    %130 = tpu.concatenate %122, %123, %129 in 0 : vector<16x256xbf16>, vector<16x256xbf16>, vector<16x256xbf16> -> vector<48x256xbf16>
    %c1_41 = arith.constant 1 : index
    %c0_42 = arith.constant 0 : index
    %c0_43 = arith.constant 0 : index
    %131 = vector.load %arg4[%c1_41, %c0_42, %c0_43] : memref<3x16x48xbf16, #tpu.memory_space<vmem>>, vector<1x16x48xbf16>
    %132 = vector.shape_cast %131 : vector<1x16x48xbf16> to vector<16x48xbf16>
    %cst_44 = arith.constant dense<0.000000e+00> : vector<16x256xf32>
    %133 = tpu.matmul %132, %130, %cst_44 {dimension_numbers = #tpu.dot_dimension_numbers<[1], [0], [0], [1], [0, 0, 1, 1], [], []>} : vector<16x48xbf16>, vector<48x256xbf16>, vector<16x256xf32> -> vector<16x256xf32>
    %134 = arith.addf %116, %133 : vector<16x256xf32>
    %135 = vector.extract_strided_slice %92 {offsets = [0, 143], sizes = [16, 256], strides = [1, 1]} : vector<16x401xbf16> to vector<16x256xbf16>
    %136 = arith.andi %6, %9 : vector<1x256xi1>
    %c0_i32_45 = arith.constant 0 : i32
    %137 = arith.sitofp %c0_i32_45 : i32 to bf16
    %138 = vector.shape_cast %136 : vector<1x256xi1> to vector<1x256xi1>
    %139 = vector.broadcast %138 : vector<1x256xi1> to vector<16x256xi1>
    %140 = vector.broadcast %137 : bf16 to vector<16x256xbf16>
    %141 = arith.select %139, %135, %140 : vector<16x256xi1>, vector<16x256xbf16>
    %142 = vector.extract_strided_slice %92 {offsets = [0, 144], sizes = [16, 256], strides = [1, 1]} : vector<16x401xbf16> to vector<16x256xbf16>
    %c0_i32_46 = arith.constant 0 : i32
    %143 = arith.sitofp %c0_i32_46 : i32 to bf16
    %144 = vector.shape_cast %6 : vector<1x256xi1> to vector<1x256xi1>
    %145 = vector.broadcast %144 : vector<1x256xi1> to vector<16x256xi1>
    %146 = vector.broadcast %143 : bf16 to vector<16x256xbf16>
    %147 = arith.select %145, %142, %146 : vector<16x256xi1>, vector<16x256xbf16>
    %148 = vector.extract_strided_slice %92 {offsets = [0, 145], sizes = [16, 256], strides = [1, 1]} : vector<16x401xbf16> to vector<16x256xbf16>
    %149 = arith.andi %6, %12 : vector<1x256xi1>
    %c0_i32_47 = arith.constant 0 : i32
    %150 = arith.sitofp %c0_i32_47 : i32 to bf16
    %151 = vector.shape_cast %149 : vector<1x256xi1> to vector<1x256xi1>
    %152 = vector.broadcast %151 : vector<1x256xi1> to vector<16x256xi1>
    %153 = vector.broadcast %150 : bf16 to vector<16x256xbf16>
    %154 = arith.select %152, %148, %153 : vector<16x256xi1>, vector<16x256xbf16>
    %155 = tpu.concatenate %141, %147, %154 in 0 : vector<16x256xbf16>, vector<16x256xbf16>, vector<16x256xbf16> -> vector<48x256xbf16>
    %c2_48 = arith.constant 2 : index
    %c0_49 = arith.constant 0 : index
    %c0_50 = arith.constant 0 : index
    %156 = vector.load %arg4[%c2_48, %c0_49, %c0_50] : memref<3x16x48xbf16, #tpu.memory_space<vmem>>, vector<1x16x48xbf16>
    %157 = vector.shape_cast %156 : vector<1x16x48xbf16> to vector<16x48xbf16>
    %cst_51 = arith.constant dense<0.000000e+00> : vector<16x256xf32>
    %158 = tpu.matmul %157, %155, %cst_51 {dimension_numbers = #tpu.dot_dimension_numbers<[1], [0], [0], [1], [0, 0, 1, 1], [], []>} : vector<16x48xbf16>, vector<48x256xbf16>, vector<16x256xf32> -> vector<16x256xf32>
    %159 = arith.addf %134, %158 : vector<16x256xf32>
    %c0_52 = arith.constant 0 : index
    %c0_53 = arith.constant 0 : index
    %160 = vector.load %arg5[%c0_52, %c0_53] : memref<16x1xf32, #tpu.memory_space<vmem>>, vector<16x1xf32>
    %161 = vector.broadcast %160 : vector<16x1xf32> to vector<16x256xf32>
    %162 = arith.addf %159, %161 : vector<16x256xf32>
    %cst_54 = arith.constant 0.000000e+00 : f32
    %163 = vector.broadcast %cst_54 : f32 to vector<16x256xf32>
    %164 = arith.maximumf %162, %163 : vector<16x256xf32>
    %c0_55 = arith.constant 0 : index
    %c0_56 = arith.constant 0 : index
    %c0_57 = arith.constant 0 : index
    %165 = vector.load %arg8[%c0_55, %c0_56, %c0_57] : memref<1x16x256xf32, #tpu.memory_space<vmem>>, vector<1x16x256xf32>
    %166 = vector.shape_cast %165 : vector<1x16x256xf32> to vector<16x256xf32>
    %167 = vector.shape_cast %164 : vector<16x256xf32> to vector<1x16x256xf32>
    tpu.vector_store %arg8[%c0_55, %c0_56, %c0_57], %167 {strides = array<i32>} : memref<1x16x256xf32, #tpu.memory_space<vmem>>, vector<1x16x256xf32>,
    %c0_58 = arith.constant 0 : index
    %c0_59 = arith.constant 0 : index
    %168 = vector.load %arg7[%c0_58, %c0_59] : memref<15x8xf32, #tpu.memory_space<vmem>>, vector<15x8xf32>
    %169 = vector.extract_strided_slice %164 {offsets = [0, 0], sizes = [16, 16], strides = [1, 1]} : vector<16x256xf32> to vector<16x16xf32>
    %170 = vector.extract_strided_slice %164 {offsets = [0, 16], sizes = [16, 16], strides = [1, 1]} : vector<16x256xf32> to vector<16x16xf32>
    %171 = arith.maximumf %169, %170 : vector<16x16xf32>
    %172 = vector.extract_strided_slice %171 {offsets = [0, 0], sizes = [16, 15], strides = [1, 1]} : vector<16x16xf32> to vector<16x15xf32>
    %173 = vector.extract_strided_slice %171 {offsets = [0, 1], sizes = [16, 15], strides = [1, 1]} : vector<16x16xf32> to vector<16x15xf32>
    %174 = arith.maximumf %172, %173 : vector<16x15xf32>
    %cst_60 = arith.constant dense<0.000000e+00> : vector<16x8xf32>
    %175 = tpu.matmul %174, %168, %cst_60 {dimension_numbers = #tpu.dot_dimension_numbers<[1], [0], [0], [1], [0, 0, 1, 1], [], []>} : vector<16x15xf32>, vector<15x8xf32>, vector<16x8xf32> -> vector<16x8xf32>
    %176 = vector.extract_strided_slice %164 {offsets = [0, 32], sizes = [16, 16], strides = [1, 1]} : vector<16x256xf32> to vector<16x16xf32>
    %177 = vector.extract_strided_slice %164 {offsets = [0, 48], sizes = [16, 16], strides = [1, 1]} : vector<16x256xf32> to vector<16x16xf32>
    %178 = arith.maximumf %176, %177 : vector<16x16xf32>
    %179 = vector.extract_strided_slice %178 {offsets = [0, 0], sizes = [16, 15], strides = [1, 1]} : vector<16x16xf32> to vector<16x15xf32>
    %180 = vector.extract_strided_slice %178 {offsets = [0, 1], sizes = [16, 15], strides = [1, 1]} : vector<16x16xf32> to vector<16x15xf32>
    %181 = arith.maximumf %179, %180 : vector<16x15xf32>
    %cst_61 = arith.constant dense<0.000000e+00> : vector<16x8xf32>
    %182 = tpu.matmul %181, %168, %cst_61 {dimension_numbers = #tpu.dot_dimension_numbers<[1], [0], [0], [1], [0, 0, 1, 1], [], []>} : vector<16x15xf32>, vector<15x8xf32>, vector<16x8xf32> -> vector<16x8xf32>
    %183 = vector.extract_strided_slice %164 {offsets = [0, 64], sizes = [16, 16], strides = [1, 1]} : vector<16x256xf32> to vector<16x16xf32>
    %184 = vector.extract_strided_slice %164 {offsets = [0, 80], sizes = [16, 16], strides = [1, 1]} : vector<16x256xf32> to vector<16x16xf32>
    %185 = arith.maximumf %183, %184 : vector<16x16xf32>
    %186 = vector.extract_strided_slice %185 {offsets = [0, 0], sizes = [16, 15], strides = [1, 1]} : vector<16x16xf32> to vector<16x15xf32>
    %187 = vector.extract_strided_slice %185 {offsets = [0, 1], sizes = [16, 15], strides = [1, 1]} : vector<16x16xf32> to vector<16x15xf32>
    %188 = arith.maximumf %186, %187 : vector<16x15xf32>
    %cst_62 = arith.constant dense<0.000000e+00> : vector<16x8xf32>
    %189 = tpu.matmul %188, %168, %cst_62 {dimension_numbers = #tpu.dot_dimension_numbers<[1], [0], [0], [1], [0, 0, 1, 1], [], []>} : vector<16x15xf32>, vector<15x8xf32>, vector<16x8xf32> -> vector<16x8xf32>
    %190 = vector.extract_strided_slice %164 {offsets = [0, 96], sizes = [16, 16], strides = [1, 1]} : vector<16x256xf32> to vector<16x16xf32>
    %191 = vector.extract_strided_slice %164 {offsets = [0, 112], sizes = [16, 16], strides = [1, 1]} : vector<16x256xf32> to vector<16x16xf32>
    %192 = arith.maximumf %190, %191 : vector<16x16xf32>
    %193 = vector.extract_strided_slice %192 {offsets = [0, 0], sizes = [16, 15], strides = [1, 1]} : vector<16x16xf32> to vector<16x15xf32>
    %194 = vector.extract_strided_slice %192 {offsets = [0, 1], sizes = [16, 15], strides = [1, 1]} : vector<16x16xf32> to vector<16x15xf32>
    %195 = arith.maximumf %193, %194 : vector<16x15xf32>
    %cst_63 = arith.constant dense<0.000000e+00> : vector<16x8xf32>
    %196 = tpu.matmul %195, %168, %cst_63 {dimension_numbers = #tpu.dot_dimension_numbers<[1], [0], [0], [1], [0, 0, 1, 1], [], []>} : vector<16x15xf32>, vector<15x8xf32>, vector<16x8xf32> -> vector<16x8xf32>
    %197 = vector.extract_strided_slice %164 {offsets = [0, 128], sizes = [16, 16], strides = [1, 1]} : vector<16x256xf32> to vector<16x16xf32>
    %198 = vector.extract_strided_slice %164 {offsets = [0, 144], sizes = [16, 16], strides = [1, 1]} : vector<16x256xf32> to vector<16x16xf32>
    %199 = arith.maximumf %197, %198 : vector<16x16xf32>
    %200 = vector.extract_strided_slice %199 {offsets = [0, 0], sizes = [16, 15], strides = [1, 1]} : vector<16x16xf32> to vector<16x15xf32>
    %201 = vector.extract_strided_slice %199 {offsets = [0, 1], sizes = [16, 15], strides = [1, 1]} : vector<16x16xf32> to vector<16x15xf32>
    %202 = arith.maximumf %200, %201 : vector<16x15xf32>
    %cst_64 = arith.constant dense<0.000000e+00> : vector<16x8xf32>
    %203 = tpu.matmul %202, %168, %cst_64 {dimension_numbers = #tpu.dot_dimension_numbers<[1], [0], [0], [1], [0, 0, 1, 1], [], []>} : vector<16x15xf32>, vector<15x8xf32>, vector<16x8xf32> -> vector<16x8xf32>
    %204 = vector.extract_strided_slice %164 {offsets = [0, 160], sizes = [16, 16], strides = [1, 1]} : vector<16x256xf32> to vector<16x16xf32>
    %205 = vector.extract_strided_slice %164 {offsets = [0, 176], sizes = [16, 16], strides = [1, 1]} : vector<16x256xf32> to vector<16x16xf32>
    %206 = arith.maximumf %204, %205 : vector<16x16xf32>
    %207 = vector.extract_strided_slice %206 {offsets = [0, 0], sizes = [16, 15], strides = [1, 1]} : vector<16x16xf32> to vector<16x15xf32>
    %208 = vector.extract_strided_slice %206 {offsets = [0, 1], sizes = [16, 15], strides = [1, 1]} : vector<16x16xf32> to vector<16x15xf32>
    %209 = arith.maximumf %207, %208 : vector<16x15xf32>
    %cst_65 = arith.constant dense<0.000000e+00> : vector<16x8xf32>
    %210 = tpu.matmul %209, %168, %cst_65 {dimension_numbers = #tpu.dot_dimension_numbers<[1], [0], [0], [1], [0, 0, 1, 1], [], []>} : vector<16x15xf32>, vector<15x8xf32>, vector<16x8xf32> -> vector<16x8xf32>
    %211 = vector.extract_strided_slice %164 {offsets = [0, 192], sizes = [16, 16], strides = [1, 1]} : vector<16x256xf32> to vector<16x16xf32>
    %212 = vector.extract_strided_slice %164 {offsets = [0, 208], sizes = [16, 16], strides = [1, 1]} : vector<16x256xf32> to vector<16x16xf32>
    %213 = arith.maximumf %211, %212 : vector<16x16xf32>
    %214 = vector.extract_strided_slice %213 {offsets = [0, 0], sizes = [16, 15], strides = [1, 1]} : vector<16x16xf32> to vector<16x15xf32>
    %215 = vector.extract_strided_slice %213 {offsets = [0, 1], sizes = [16, 15], strides = [1, 1]} : vector<16x16xf32> to vector<16x15xf32>
    %216 = arith.maximumf %214, %215 : vector<16x15xf32>
    %cst_66 = arith.constant dense<0.000000e+00> : vector<16x8xf32>
    %217 = tpu.matmul %216, %168, %cst_66 {dimension_numbers = #tpu.dot_dimension_numbers<[1], [0], [0], [1], [0, 0, 1, 1], [], []>} : vector<16x15xf32>, vector<15x8xf32>, vector<16x8xf32> -> vector<16x8xf32>
    %218 = vector.extract_strided_slice %164 {offsets = [0, 224], sizes = [16, 16], strides = [1, 1]} : vector<16x256xf32> to vector<16x16xf32>
    %219 = vector.extract_strided_slice %164 {offsets = [0, 240], sizes = [16, 16], strides = [1, 1]} : vector<16x256xf32> to vector<16x16xf32>
    %220 = arith.maximumf %218, %219 : vector<16x16xf32>
    %221 = vector.extract_strided_slice %220 {offsets = [0, 0], sizes = [16, 15], strides = [1, 1]} : vector<16x16xf32> to vector<16x15xf32>
    %222 = vector.extract_strided_slice %220 {offsets = [0, 1], sizes = [16, 15], strides = [1, 1]} : vector<16x16xf32> to vector<16x15xf32>
    %223 = arith.maximumf %221, %222 : vector<16x15xf32>
    %cst_67 = arith.constant dense<0.000000e+00> : vector<16x8xf32>
    %224 = tpu.matmul %223, %168, %cst_67 {dimension_numbers = #tpu.dot_dimension_numbers<[1], [0], [0], [1], [0, 0, 1, 1], [], []>} : vector<16x15xf32>, vector<15x8xf32>, vector<16x8xf32> -> vector<16x8xf32>
    %225 = tpu.concatenate %175, %182, %189, %196, %203, %210, %217, %224 in 1 : vector<16x8xf32>, vector<16x8xf32>, vector<16x8xf32>, vector<16x8xf32>, vector<16x8xf32>, vector<16x8xf32>, vector<16x8xf32>, vector<16x8xf32> -> vector<16x64xf32>
    %c0_68 = arith.constant 0 : index
    %c0_69 = arith.constant 0 : index
    %c0_70 = arith.constant 0 : index
    %226 = vector.load %arg9[%c0_68, %c0_69, %c0_70] : memref<1x16x64xf32, #tpu.memory_space<vmem>>, vector<1x16x64xf32>
    %227 = vector.shape_cast %226 : vector<1x16x64xf32> to vector<16x64xf32>
    %228 = vector.shape_cast %225 : vector<16x64xf32> to vector<1x16x64xf32>
    tpu.vector_store %arg9[%c0_68, %c0_69, %c0_70], %228 {strides = array<i32>} : memref<1x16x64xf32, #tpu.memory_space<vmem>>, vector<1x16x64xf32>,
    return
  }
  func.func @transform_0(%arg0: i32) -> (i32, i32, i32) {
    %c0_i32 = arith.constant 0 : i32
    %c0_i32_0 = arith.constant 0 : i32
    %c0_i32_1 = arith.constant 0 : i32
    return %arg0, %c0_i32, %c0_i32_0 : i32, i32, i32
  }
  func.func @transform_1(%arg0: i32) -> (i32, i32, i32) {
    %c0_i32 = arith.constant 0 : i32
    %c0_i32_0 = arith.constant 0 : i32
    %c0_i32_1 = arith.constant 0 : i32
    %c0_i32_2 = arith.constant 0 : i32
    return %c0_i32, %c0_i32_0, %c0_i32_1 : i32, i32, i32
  }
  func.func @transform_2(%arg0: i32) -> (i32, i32) {
    %c0_i32 = arith.constant 0 : i32
    %c0_i32_0 = arith.constant 0 : i32
    %c0_i32_1 = arith.constant 0 : i32
    return %c0_i32, %c0_i32_0 : i32, i32
  }
  func.func @transform_3(%arg0: i32) -> (i32, i32, i32) {
    %c0_i32 = arith.constant 0 : i32
    %c0_i32_0 = arith.constant 0 : i32
    %c0_i32_1 = arith.constant 0 : i32
    %c0_i32_2 = arith.constant 0 : i32
    return %c0_i32, %c0_i32_0, %c0_i32_1 : i32, i32, i32
  }
  func.func @transform_4(%arg0: i32) -> (i32, i32) {
    %c0_i32 = arith.constant 0 : i32
    %c0_i32_0 = arith.constant 0 : i32
    %c0_i32_1 = arith.constant 0 : i32
    return %c0_i32, %c0_i32_0 : i32, i32
  }
  func.func @transform_5(%arg0: i32) -> (i32, i32) {
    %c0_i32 = arith.constant 0 : i32
    %c0_i32_0 = arith.constant 0 : i32
    %c0_i32_1 = arith.constant 0 : i32
    return %c0_i32, %c0_i32_0 : i32, i32
  }
  func.func @transform_6(%arg0: i32) -> (i32, i32) {
    %c0_i32 = arith.constant 0 : i32
    %c0_i32_0 = arith.constant 0 : i32
    %c0_i32_1 = arith.constant 0 : i32
    return %c0_i32, %c0_i32_0 : i32, i32
  }
  func.func @transform_7(%arg0: i32) -> (i32, i32, i32) {
    %c0_i32 = arith.constant 0 : i32
    %c0_i32_0 = arith.constant 0 : i32
    %c0_i32_1 = arith.constant 0 : i32
    return %arg0, %c0_i32, %c0_i32_0 : i32, i32, i32
  }
  func.func @transform_8(%arg0: i32) -> (i32, i32, i32) {
    %c0_i32 = arith.constant 0 : i32
    %c0_i32_0 = arith.constant 0 : i32
    %c0_i32_1 = arith.constant 0 : i32
    return %arg0, %c0_i32, %c0_i32_0 : i32, i32, i32
  }
}

</mosaic_0001>

<bundles_post_ra>
// kernel: down_step.1
= control target key start
LH: loop header
LB: loop body
LE: loop exit
PB: predicated region body
PF: predicated region fallthrough
CT: control target
= control target key end

     0   :  { %s2736_s27 = smov 0   ;;  %s3338_s0 = inlined_call_operand.vmem [shape: bf16[2,16,401], index: 0, kind: input, shape index: {}]   ;;  %s3339_s1 = inlined_call_operand.vmem [shape: bf16[3,16,48], index: 1, kind: input, shape index: {}]   ;;  %s3340_s2 = inlined_call_operand.vmem [shape: f32[16,1], index: 2, kind: input, shape index: {}]   ;;  %s3341_s3 = inlined_call_operand.vmem [shape: bf16[3,16,48], index: 3, kind: input, shape index: {}]   ;;  %s3342_s4 = inlined_call_operand.vmem [shape: f32[16,1], index: 4, kind: input, shape index: {}]   ;;  %s3343_s5 = inlined_call_operand.vmem [shape: f32[4,256], index: 5, kind: input, shape index: {}]   ;;  %s3344_s6 = inlined_call_operand.vmem [shape: f32[15,8], index: 6, kind: input, shape index: {}]   ;;  %s3345_s7 = inlined_call_operand.vmem [shape: f32[2,16,256], index: 7, kind: output, shape index: {0}]   ;;  %s3346_s8 = inlined_call_operand.vmem [shape: f32[2,16,64], index: 8, kind: output, shape index: {1}]  }
   0x1 LB: > { %s2390_s28 = sadd.s32 4294967295, %s2670_s27   ;;  %p2394_p0 = scmp.ge.s32.totalorder %s2670_s27, 1  ;;  %s2670_s27 = sphi %s2736_s27, %s19_s27  }
   0x2   : > { %p265_p1 = scmp.lt.s32.totalorder %s2670_s27, 3 }
   0x4   : > { %p266_p2 = pnand %p2394_p0, %p265_p1 }
   0x5   : > { %p304_p3 = scmp.lt.s32.totalorder (!%p266_p2), %s2390_s28, 1  ;;  %v2747_v0 = vld [vmem:[%s3343_s5] sm:$0xff] (!%p266_p2)  ;;  %v334_v1 = vlaneseq (!%p266_p2)  ;;  %v2672_v2 = vmov (!%p266_p2), 0   ;;  %s2673_s13 = smov (!%p266_p2), 127  }
   0x6   : > { %269 = sbr.rel (%p266_p2) target bundleno = 1830 (0x726), region = 48  ;;  %vm323_vm0 = vcmp.gt.f32.partialorder (!%p266_p2), %v2747_v0, 0.5  ;;  %2654 = vset.pattern.permute.xlu0 (!%p266_p2), %v2672_v2  ;;  %677 = vmatprep.mubr.bf16.mxu0 (!%p266_p2), %v2672_v2  ;;  %s2674_s14 = smov (!%p266_p2), 112  }
   0x7   : > { %v2757_v3 = vsel (!%p266_p2), %vm323_vm0, 1, %v2672_v2  ;;  %v2759_v4 = vshrl.u32 (!%p266_p2), %v334_v1, 7  ;;  %2655 = vset.pattern.permute.xlu1 (!%p266_p2), %v2672_v2  ;;  %1222 = vmatprep.mubr.bf16.mxu1 (!%p266_p2), %v2672_v2  ;;  %s2675_s15 = smov (!%p266_p2), 113   ;;  %s2676_s16 = smov (!%p266_p2), 111  }
   0x8   : > { %v2402_v5 = vrot.slane (!%p266_p2), %v2757_v3, 11  ;;  %v2401_v6 = vrot.slane (!%p266_p2), %v2757_v3, 10  ;;  %s2677_s17 = smov (!%p266_p2), 126   ;;  %s2678_s18 = smov (!%p266_p2), 1  }
   0x9   : > { %v2767_v7 = vsub.s32 (!%p266_p2), 0, %v2759_v4  ;;  %v2770_v8 = vsub.s32 (!%p266_p2), 4, %v2759_v4  ;;  %v493_v9 = vsub.s32 (!%p266_p2), 2, %v2759_v4  ;;  %v497_v10 = vsub.s32 (!%p266_p2), 6, %v2759_v4  ;;  %s2679_s19 = smov (!%p266_p2), 17   ;;  %s2680_s24 = smov (!%p266_p2), 16  }
   0xa   : > { %vm398_vm1 = vcmp.ne.s32.totalorder (!%p266_p2), %v2402_v5, 0  ;;  %vm2779_vm2 = vcmp.ne.s32.totalorder (!%p266_p2), %v2401_v6, 0  ;;  %v523_v40 = vsub.s32 (!%p266_p2), 3, %v2759_v4  ;;  %v527_v41 = vsub.s32 (!%p266_p2), 7, %v2759_v4 }
   0xb   : > { %v368_v15 = vrot.slane (!%p266_p2), %v2757_v3, %v2767_v7  ;;  %v372_v16 = vrot.slane (!%p266_p2), %v2757_v3, %v2770_v8  ;;  %v494_v17 = vrot.slane (!%p266_p2), %v2757_v3, %v493_v9  ;;  %v498_v18 = vrot.slane (!%p266_p2), %v2757_v3, %v497_v10  ;;  %vm399_vm3 = vmand (!%p266_p2), %vm323_vm0, %vm398_vm1 }
   0xc   : > { %v400_v22 = vsel (!%p266_p2), %vm399_vm3, 1, %v2672_v2  ;;  %vm332_vm4 = vmand (!%p266_p2), %vm323_vm0, %vm2779_vm2  ;;  %v524_v42 = vrot.slane (!%p266_p2), %v2757_v3, %v523_v40  ;;  %v528_v43 = vrot.slane (!%p266_p2), %v2757_v3, %v527_v41 }
   0xd   : > { %s3362_s28 = smov (!%p304_p3, %s2390_s28), 1  ;;  %v376_v20 = vrot.slane %v368_v15, %v2767_v7  ;;  %v380_v21 = vrot.slane %v372_v16, %v2767_v7  ;;  %v502_v23 = vrot.slane %v494_v17, %v493_v9  ;;  %v404_v24 = vrot.slane %v400_v22, %v2767_v7 }
   0xe   : > { %s2472_s9 = sshll.u32 %s3362_s28, 5  ;;  %v408_v25 = vrot.slane %v400_v22, %v2770_v8  ;;  %v506_v26 = vrot.slane %v498_v18, %v493_v9  ;;  %v2813_v27 = vsel %vm332_vm4, 1, %v2672_v2  ;;  %v532_v44 = vrot.slane %v524_v42, %v523_v40  ;;  %s2474_s20 = sshll.u32 %s3362_s28, 4 }
   0xf   : > { %s308_s12 = scalar_lea.vmem %s3338_s0, %s2472_s9  ;;  %vm381_vm5 = vcmp.eq.s32.totalorder %v376_v20, 1  ;;  %vm382_vm6 = vcmp.eq.s32.totalorder %v380_v21, 1  ;;  %vm507_vm7 = vcmp.eq.s32.totalorder %v502_v23, 1  ;;  %v412_v28 = vrot.slane %v404_v24, %v2767_v7  ;;  %s313_s30 = scalar_lea.vmem %s3345_s7, %s2472_s9 }
  0x10   : > { %v2783_v12 = vld [vmem:[%s308_s12 + $0x10] sm:$0xff]  ;;  %v2785_v13 = vld [vmem:[%s308_s12] sm:$0xff]  ;;  %v2787_v14 = vld [vmem:[%s308_s12 + $0x18] sm:$0xff]  ;;  %v416_v29 = vrot.slane %v408_v25, %v2767_v7  ;;  %vm508_vm9 = vcmp.eq.s32.totalorder %v506_v26, 1  ;;  %v337_v30 = vrot.slane %v2813_v27, %v2767_v7  ;;  %v341_v32 = vrot.slane %v2813_v27, %v2770_v8  ;;  %s318_s23 = scalar_lea.vmem %s3346_s8, %s2474_s20 }
  0x11   : > { %548 = vrot.lane.b32.xlu1 %v2783_v12, %s2673_s13  ;;  %544 = vrot.lane.b32.xlu0 %v2785_v13, %s2673_s13  ;;  %v2799_v19 = vld [vmem:[%s308_s12 + $0x8] sm:$0xff]  ;;  %vm383_vm8 = vmpackc.low %vm382_vm6, %vm381_vm5  ;;  %vm417_vm10 = vcmp.eq.s32.totalorder %v412_v28, 1  ;;  %v2415_v37 = vcombine.high %v2785_v13, %v2783_v12  ;;  %v536_v45 = vrot.slane %v528_v43, %v523_v40  ;;  %vm537_vm2 = vcmp.eq.s32.totalorder %v532_v44, 1  ;;  %s2681_s12 = smov 15  }
  0x12   : > { %v2824_v31 = vsel %vm383_vm8, 65537, %v2672_v2  ;;  %vm418_vm11 = vcmp.eq.s32.totalorder %v416_v29, 1  ;;  %vm509_vm12 = vmpackc.low %vm508_vm9, %vm507_vm7  ;;  %v345_v33 = vrot.slane %v337_v30, %v2767_v7  ;;  %v349_v34 = vrot.slane %v341_v32, %v2767_v7 }
  0x13   : > { %vm419_vm13 = vmpackc.low %vm418_vm11, %vm417_vm10  ;;  %v2838_v36 = vsel %vm509_vm12, 65537, %v2672_v2  ;;  %v2416_v38 = vcombine.low %v2799_v19, %v2787_v14  ;;  %vm538_vm3 = vcmp.eq.s32.totalorder %v536_v45, 1  ;;  %vm464_vm4 = vcmask 1039360  }
  0x14   : > { %v2833_v35 = vsel %vm419_vm13, 65537, %v2672_v2  ;;  %vm350_vm14 = vcmp.eq.s32.totalorder %v345_v33, 1  ;;  %vm351_vm15 = vcmp.eq.s32.totalorder %v349_v34, 1  ;;  %vm556_vm5 = vcmask 1043456   ;;  %vm2857_vm6 = vmpackc.low %vm538_vm3, %vm537_vm2 }
  0x15   : > { %550 = vrot.lane.b32.xlu1 %v2787_v14, %s2673_s13  ;;  %546 = vrot.lane.b32.xlu0 %v2799_v19, %s2673_s13  ;;  %vm352_vm1 = vmpackc.low %vm351_vm15, %vm350_vm14  ;;  %vm388_vm7 = vcmask 916480   ;;  %vm424_vm8 = vcmask 924672   ;;  %vm486_vm3 = vcmask 1031168  }
  0x16   : > { %v2848_v39 = vsel %vm352_vm1, 65537, %v2672_v2  ;;  %vm357_vm1 = vcmask 908288  }
  0x19   : > { %385 = vrot.lane.b32.xlu0 %v2824_v31, %s2674_s14  ;;  %421 = vrot.lane.b32.xlu1 %v2833_v35, %s2675_s15 }
  0x1d   : > { %511 = vrot.lane.b32.xlu0 %v2838_v36, %s2673_s13  ;;  %584 = vrot.lane.b32.xlu1 %v2415_v37, %s2673_s13 }
  0x21   : > { %586 = vrot.lane.b32.xlu0 %v2416_v38, %s2673_s13  ;;  %354 = vrot.lane.b32.xlu1 %v2848_v39, %s2676_s16 }
  0x83   : > { %v549_v46 = vpop.permute.xlu1 %548  ;;  %v545_v47 = vpop.permute.xlu0 %544 }
  0x84   : > { %v554_v50 = vrot.slane %v549_v46, 4  ;;  %v552_v51 = vrot.slane %v545_v47, 4 }
  0x87   : > { %v551_v48 = vpop.permute.xlu1 %550  ;;  %v547_v49 = vpop.permute.xlu0 %546 }
  0x88   : > { %v555_v52 = vrot.slane %v551_v48, 4  ;;  %v553_v53 = vrot.slane %v547_v49, 4 }
  0x8a   : > { %v559_v55 = vsel %vm556_vm5, %v554_v50, %v555_v52  ;;  %v557_v56 = vsel %vm556_vm5, %v552_v51, %v553_v53 }
  0x8b   : > { %v560_v57 = vsel %vm464_vm4, %v559_v55, %v551_v48  ;;  %v558_v58 = vsel %vm464_vm4, %v557_v56, %v547_v49  ;;  %v386_v59 = vpop.permute.xlu0 %385  ;;  %v422_v63 = vpop.permute.xlu1 %421 }
  0x8c   : > { %v564_v60 = vsel %vm2857_vm6, %v560_v57, 0  ;;  %v563_v61 = vsel %vm2857_vm6, %v558_v58, 0  ;;  %v387_v62 = vrot.slane %v386_v59, 4  ;;  %v423_v1 = vrot.slane %v422_v63, 4 }
  0x8d   : > { %v2417_v5 = vcombine.low %v563_v61, %v564_v60  ;;  %v2418_v6 = vcombine.high %v563_v61, %v564_v60 }
  0x8e   : > { %v389_v9 = vsel %vm388_vm7, %v387_v62, %v386_v59  ;;  %vm391_vm9 = vcmp.ne.s16.totalorder %v387_v62, 0  ;;  %v425_v10 = vsel %vm424_vm8, %v423_v1, %v422_v63  ;;  %vm2871_vm11 = vcmp.ne.s16.totalorder %v423_v1, 0 }
  0x8f   : > { %vm390_vm10 = vcmp.ne.s16.totalorder %v389_v9, 0  ;;  %597 = vrot.lane.b32.xlu0 %v2417_v5, %s2673_s13  ;;  %599 = vrot.lane.b32.xlu1 %v2418_v6, %s2673_s13  ;;  %v393_v15 = vsel %vm391_vm9, %v2799_v19, 0  ;;  %vm426_vm12 = vcmp.ne.s16.totalorder %v425_v10, 0  ;;  %v395_v18 = vsel %vm391_vm9, %v2787_v14, 0  ;;  %v512_v20 = vpop.permute.xlu0 %511  ;;  %v585_v33 = vpop.permute.xlu1 %584 }
  0x90   : > { %v392_v16 = vsel %vm390_vm10, %v2785_v13, 0  ;;  %v394_v17 = vsel %vm390_vm10, %v2783_v12, 0  ;;  %v428_v21 = vsel %vm426_vm12, %v2785_v13, 0  ;;  %v430_v22 = vsel %vm426_vm12, %v2783_v12, 0 }
  0x91   : > { %v2407_v23 = vcombine.high %v392_v16, %v394_v17  ;;  %v2408_v24 = vcombine.low %v393_v15, %v395_v18  ;;  %v2410_v25 = vcombine.high %v428_v21, %v430_v22  ;;  %v513_v26 = vrot.slane %v512_v20, 4 }
  0x92   : > { %v429_v28 = vsel %vm2871_vm11, %v2799_v19, 0  ;;  %v431_v29 = vsel %vm2871_vm11, %v2787_v14, 0  ;;  %v2406_v30 = vcombine.low %v392_v16, %v394_v17  ;;  %v2409_v42 = vcombine.low %v428_v21, %v430_v22 }
  0x93   : > { %460 = vrot.lane.b32.xlu0 %v2407_v23, %s2673_s13  ;;  %462 = vrot.lane.b32.xlu1 %v2408_v24, %s2673_s13  ;;  %v514_v32 = vsel %vm464_vm4, %v513_v26, %v512_v20  ;;  %vm516_vm13 = vcmp.ne.s16.totalorder %v513_v26, 0  ;;  %v2411_v34 = vcombine.low %v429_v28, %v431_v29  ;;  %v355_v43 = vpop.permute.xlu1 %354  ;;  %v587_v46 = vpop.permute.xlu0 %586  ;;  %vm628_vm9 = vcmask 7168  }
  0x94   : > { %vm515_vm14 = vcmp.ne.s16.totalorder %v514_v32, 0  ;;  %v518_v40 = vsel %vm516_vm13, %v2799_v19, 0  ;;  %v520_v41 = vsel %vm516_vm13, %v2787_v14, 0  ;;  %v356_v47 = vrot.slane %v355_v43, 4 }
  0x95   : > { %v517_v37 = vsel %vm515_vm14, %v2785_v13, 0  ;;  %v519_v38 = vsel %vm515_vm14, %v2783_v12, 0  ;;  %v2414_v44 = vcombine.low %v518_v40, %v520_v41  ;;  %v588_v49 = vsel %vm464_vm4, %v585_v33, %v587_v46 }
  0x96   : > { %v2413_v45 = vcombine.high %v517_v37, %v519_v38  ;;  %v2412_v48 = vcombine.low %v517_v37, %v519_v38  ;;  %vm360_vm15 = vcmp.ne.s16.totalorder %v356_v47, 0  ;;  %v358_v53 = vsel %vm357_vm1, %v356_v47, %v355_v43 }
  0x97   : > { %458 = vrot.lane.b32.xlu0 %v2406_v30, %s2673_s13  ;;  %482 = vrot.lane.b32.xlu1 %v2410_v25, %s2677_s17  ;;  %v362_v50 = vsel %vm360_vm15, %v2799_v19, 0  ;;  %v364_v51 = vsel %vm360_vm15, %v2787_v14, 0  ;;  %vm359_vm2 = vcmp.ne.s16.totalorder %v358_v53, 0  ;;  %v2956_v29 = vsub.s32 1, %v2759_v4 }
  0x98   : > { %v2405_v52 = vcombine.low %v362_v50, %v364_v51  ;;  %v361_v55 = vsel %vm359_vm2, %v2785_v13, 0  ;;  %v363_v56 = vsel %vm359_vm2, %v2783_v12, 0  ;;  %v1034_v40 = vrot.slane %v2824_v31, %v2770_v8 }
  0x99   : > { %v2404_v57 = vcombine.high %v361_v55, %v363_v56  ;;  %v2403_v58 = vcombine.low %v361_v55, %v363_v56  ;;  %v817_v30 = vrot.slane %v2757_v3, %v2956_v29  ;;  %v856_v54 = vrot.slane %v2813_v27, %v2956_v29 }
  0x9a   : > { %v1030_v41 = vrot.slane %v2824_v31, %v2767_v7  ;;  %v1049_v31 = vrot.slane %v2833_v35, %v2767_v7  ;;  %v1096_v51 = vrot.slane %v2838_v36, %v2770_v8  ;;  %v1011_v53 = vrot.slane %v2848_v39, %v2767_v7 }
  0x9b   : > { %484 = vrot.lane.b32.xlu0 %v2411_v34, %s2677_s17  ;;  %480 = vrot.lane.b32.xlu1 %v2409_v42, %s2677_s17  ;;  %v825_v37 = vrot.slane %v817_v30, %v2956_v29  ;;  %v864_v42 = vrot.slane %v856_v54, %v2956_v29  ;;  %v1015_v47 = vrot.slane %v2848_v39, %v2770_v8 }
  0x9d   : > { %vm869_vm12 = vcmp.eq.s32.totalorder %v864_v42, 1 }
  0x9f   : > { %614 = vrot.lane.b32.xlu1 %v2414_v44, %s2678_s18  ;;  %612 = vrot.lane.b32.xlu0 %v2413_v45, %s2678_s18 }
  0xa3   : > { %618 = vrot.lane.b32.xlu1 %v588_v49, %s2678_s18  ;;  %610 = vrot.lane.b32.xlu0 %v2412_v48, %s2678_s18 }
  0xa7   : > { %616 = vrot.lane.b32.xlu1 %v585_v33, %s2678_s18  ;;  %620 = vrot.lane.b32.xlu0 %v587_v46, %s2678_s18 }
  0xab   : > { %794 = vrot.lane.b32.xlu1 %v2785_v13, %s2675_s15  ;;  %697 = vrot.lane.b32.xlu0 %v2405_v52, %s2679_s19  ;;  %v1092_v52 = vrot.slane %v2838_v36, %v2767_v7 }
  0xaf   : > { %798 = vrot.lane.b32.xlu1 %v2783_v12, %s2675_s15  ;;  %796 = vrot.lane.b32.xlu0 %v2799_v19, %s2675_s15 }
  0xb3   : > { %835 = vrot.lane.b32.xlu1 %v2799_v19, %s2674_s14  ;;  %800 = vrot.lane.b32.xlu0 %v2787_v14, %s2675_s15 }
  0xb7   : > { %839 = vrot.lane.b32.xlu1 %v2787_v14, %s2674_s14  ;;  %833 = vrot.lane.b32.xlu0 %v2785_v13, %s2674_s14 }
  0xbb   : > { %695 = vrot.lane.b32.xlu1 %v2404_v57, %s2679_s19  ;;  %837 = vrot.lane.b32.xlu0 %v2783_v12, %s2674_s14 }
  0xbf   : > { %693 = vrot.lane.b32.xlu1 %v2403_v58, %s2679_s19 }
 0x101   : > { %v598_v59 = vpop.permute.xlu0 %597  ;;  %v600_v60 = vpop.permute.xlu1 %599 }
 0x102   : > { %622 = vrot.lane.b32.xlu0 %v598_v59, %s2678_s18  ;;  %626 = vrot.lane.b32.xlu1 %v600_v60, %s2678_s18  ;;  %v601_v63 = vsel %vm464_vm4, %v598_v59, %v600_v60 }
 0x105   : > { %v461_v61 = vpop.permute.xlu0 %460  ;;  %v463_v62 = vpop.permute.xlu1 %462 }
 0x106   : > { %624 = vrot.lane.b32.xlu0 %v601_v63, %s2678_s18  ;;  %703 = vrot.lane.b32.xlu1 %v463_v62, %s2679_s19  ;;  %v466_v6 = vsel %vm464_vm4, %v461_v61, %v463_v62  ;;  %v2425_v62 = vrot.slane %v2757_v3, 9 }
 0x108   : > { %vm772_vm15 = vcmp.ne.s32.totalorder %v2425_v62, 0 }
 0x109   : > { %v459_v1 = vpop.permute.xlu0 %458  ;;  %v483_v5 = vpop.permute.xlu1 %482  ;;  %vm773_vm2 = vmand %vm323_vm0, %vm772_vm15  ;;  %vm641_vm0 = vcmask 392192  }
 0x10a   : > { %701 = vrot.lane.b32.xlu0 %v466_v6, %s2679_s19  ;;  %v465_v11 = vsel %vm464_vm4, %v459_v1, %v461_v61 }
 0x10d   : > { %v485_v9 = vpop.permute.xlu0 %484  ;;  %v481_v10 = vpop.permute.xlu1 %480 }
 0x10e   : > { %699 = vrot.lane.b32.xlu0 %v465_v11, %s2679_s19  ;;  %v488_v15 = vsel %vm486_vm3, %v483_v5, %v485_v9  ;;  %v487_v18 = vsel %vm486_vm3, %v481_v10, %v483_v5  ;;  %v774_v5 = vsel %vm773_vm2, 1, %v2672_v2 }
 0x10f   : > { %707 = vrot.lane.b32.xlu1 %v488_v15, %s2679_s19 }
 0x111   : > { %v615_v16 = vpop.permute.xlu1 %614  ;;  %v613_v17 = vpop.permute.xlu0 %612 }
 0x112   : > { %709 = vrot.lane.b32.xlu0 %v485_v9, %s2679_s19  ;;  %v630_v20 = vsel %vm628_vm9, %v613_v17, %v615_v16  ;;  %v778_v9 = vrot.slane %v774_v5, %v2956_v29 }
 0x113   : > { %705 = vrot.lane.b32.xlu1 %v487_v18, %s2679_s19  ;;  %645 = vmatprep.subr.bf16.mxu0 %v630_v20 }
 0x115   : > { %v619_v21 = vpop.permute.xlu1 %618  ;;  %v611_v22 = vpop.permute.xlu0 %610 }
 0x116   : > { %872 = vrot.lane.b32.xlu0 %v2785_v13, %s2676_s16  ;;  %v629_v23 = vsel %vm628_vm9, %v611_v22, %v613_v17  ;;  %v2959_v13 = vsub.s32 5, %v2759_v4 }
 0x117   : > { %874 = vrot.lane.b32.xlu1 %v2799_v19, %s2676_s16  ;;  %646 = vmatpush1.bf16.msra.mxu0 %v629_v23  ;;  %v980_v19 = vld [vmem:[%s3340_s2] sm:$0xff] }
 0x118   : > { %v821_v4 = vrot.slane %v2757_v3, %v2959_v13  ;;  %v860_v34 = vrot.slane %v2813_v27, %v2959_v13  ;;  %v1053_v27 = vrot.slane %v2833_v35, %v2770_v8  ;;  %v782_v10 = vrot.slane %v774_v5, %v2959_v13 }
 0x119   : > { %v617_v24 = vpop.permute.xlu1 %616  ;;  %v621_v25 = vpop.permute.xlu0 %620  ;;  %v786_v3 = vrot.slane %v778_v9, %v2956_v29 }
 0x11a   : > { %876 = vrot.lane.b32.xlu0 %v2783_v12, %s2676_s16  ;;  %v632_v26 = vsel %vm628_vm9, %v619_v21, %v621_v25  ;;  %v631_v28 = vsel %vm628_vm9, %v617_v24, %v619_v21  ;;  %v1108_v12 = vsel %vm2857_vm6, 65537, %v2672_v2  ;;  %v829_v38 = vrot.slane %v821_v4, %v2956_v29  ;;  %v2658_v24 = vld [vmem:[%s3339_s1 + $0x8] sm:$0xff]  }
 0x11b   : > { %878 = vrot.lane.b32.xlu1 %v2787_v14, %s2676_s16  ;;  %647 = vmatprep.subr.bf16.mxu0 %v632_v26  ;;  %v981_v14 = vld [vmem:[%s3340_s2 + $0x8] sm:$0xff]  ;;  %v1116_v32 = vrot.slane %v1108_v12, %v2770_v8  ;;  %v1112_v33 = vrot.slane %v1108_v12, %v2767_v7  ;;  %v868_v43 = vrot.slane %v860_v34, %v2956_v29  ;;  %vm830_vm6 = vcmp.eq.s32.totalorder %v825_v37, 1 }
 0x11c   : > { %648 = vmatpush1.bf16.msra.mxu0 %v631_v28  ;;  %vm831_vm10 = vcmp.eq.s32.totalorder %v829_v38, 1  ;;  %v790_v17 = vrot.slane %v782_v10, %v2956_v29 }
 0x11d   : > { %vm2995_vm11 = vmpackc.low %vm831_vm10, %vm830_vm6  ;;  %vm870_vm13 = vcmp.eq.s32.totalorder %v868_v43, 1  ;;  %v795_v55 = vpop.permute.xlu1 %794  ;;  %v698_v56 = vpop.permute.xlu0 %697  ;;  %vm711_vm6 = vcmask 138240   ;;  %vm791_vm10 = vcmp.eq.s32.totalorder %v786_v3, 1  ;;  %v2660_v3 = vld [vmem:[%s3339_s1 + $0x10] sm:$0xff]  }
 0x11e   : > { %984 = vperm.xlu0 %2654, %v980_v19   ;;  %v1338_v45 = vsel %vm2995_vm11, 65537, %v2672_v2  ;;  %vm3007_vm14 = vmpackc.low %vm870_vm13, %vm869_vm12  ;;  %v802_v16 = vrot.slane %v795_v55, 4  ;;  %vm792_vm12 = vcmp.eq.s32.totalorder %v790_v17, 1 }
 0x11f   : > { %989 = vperm.xlu1 %2655, %v981_v14   ;;  %v1346_v46 = vrot.slane %v1338_v45, %v2770_v8  ;;  %v1342_v48 = vrot.slane %v1338_v45, %v2767_v7  ;;  %v1359_v35 = vsel %vm3007_vm14, 65537, %v2672_v2  ;;  %vm3052_vm13 = vmpackc.low %vm792_vm12, %vm791_vm10 }
 0x120   : > { %v1367_v49 = vrot.slane %v1359_v35, %v2770_v8  ;;  %v1363_v50 = vrot.slane %v1359_v35, %v2767_v7 }
 0x121   : > { %v799_v57 = vpop.permute.xlu1 %798  ;;  %v797_v58 = vpop.permute.xlu0 %796 }
 0x122   : > { %1119 = vrot.lane.b32.xlu0 %v1116_v32, %s2678_s18  ;;  %v803_v18 = vrot.slane %v797_v58, 4  ;;  %v804_v0 = vrot.slane %v799_v57, 4 }
 0x123   : > { %1117 = vrot.lane.b32.xlu1 %v1112_v33, %s2678_s18 }
 0x124   : > { %v806_v28 = vsel %vm556_vm5, %v802_v16, %v803_v18  ;;  %v3090_v18 = vld [vmem:[#allocation2 + $0x18] sm:$0xff] }
 0x125   : > { %v836_v59 = vpop.permute.xlu1 %835  ;;  %v801_v60 = vpop.permute.xlu0 %800  ;;  %v807_v54 = vsel %vm424_vm8, %v806_v28, %v797_v58 }
 0x126   : > { %1037 = vrot.lane.b32.xlu0 %v1034_v40, %s2674_s14  ;;  %v805_v21 = vrot.slane %v801_v60, 4  ;;  %v842_v26 = vrot.slane %v836_v59, 4  ;;  %v812_v43 = vsel %vm3052_vm13, %v807_v54, 0 }
 0x127   : > { %1035 = vrot.lane.b32.xlu1 %v1030_v41, %s2674_s14 }
 0x128   : > { %v808_v19 = vsel %vm556_vm5, %v804_v0, %v805_v21 }
 0x129   : > { %v840_v61 = vpop.permute.xlu1 %839  ;;  %v834_v63 = vpop.permute.xlu0 %833  ;;  %v809_v34 = vsel %vm424_vm8, %v808_v19, %v801_v60 }
 0x12a   : > { %1056 = vrot.lane.b32.xlu0 %v1053_v27, %s2675_s15  ;;  %v844_v13 = vrot.slane %v840_v61, 4  ;;  %v841_v12 = vrot.slane %v834_v63, 4  ;;  %v813_v27 = vsel %vm3052_vm13, %v809_v34, 0 }
 0x12b   : > { %1054 = vrot.lane.b32.xlu1 %v1049_v31, %s2675_s15 }
 0x12c   : > { %v845_v38 = vsel %vm556_vm5, %v841_v12, %v842_v26 }
 0x12d   : > { %v696_v36 = vpop.permute.xlu1 %695  ;;  %v838_v1 = vpop.permute.xlu0 %837  ;;  %v846_v45 = vsel %vm388_vm7, %v845_v38, %v836_v59 }
 0x12e   : > { %1349 = vrot.lane.b32.xlu0 %v1346_v46, %s2680_s24  ;;  %v713_v25 = vsel %vm711_vm6, %v696_v36, %v698_v56  ;;  %v843_v30 = vrot.slane %v838_v1, 4  ;;  %v2426_v56 = vcombine.low %v812_v43, %v813_v27 }
 0x12f   : > { %1347 = vrot.lane.b32.xlu1 %v1342_v48, %s2680_s24 }
 0x130   : > { %v847_v40 = vsel %vm556_vm5, %v843_v30, %v844_v13 }
 0x131   : > { %v694_v6 = vpop.permute.xlu1 %693  ;;  %v848_v46 = vsel %vm388_vm7, %v847_v40, %v840_v61 }
 0x132   : > { %1370 = vrot.lane.b32.xlu0 %v1367_v49, %s2679_s19  ;;  %v712_v14 = vsel %vm711_vm6, %v694_v6, %v696_v36 }
 0x133   : > { %1368 = vrot.lane.b32.xlu1 %v1363_v50, %s2679_s19  ;;  %v2427_v50 = vcombine.high %v812_v43, %v813_v27 }
 0x136   : > { %1099 = vrot.lane.b32.xlu0 %v1096_v51, %s2673_s13  ;;  %v2659_v51 = vld [vmem:[%s3339_s1] sm:$0xff]  }
 0x137   : > { %1097 = vrot.lane.b32.xlu1 %v1092_v52, %s2673_s13  ;;  %v851_v52 = vsel %vm2995_vm11, %v846_v45, 0 }
 0x13a   : > { %1016 = vrot.lane.b32.xlu0 %v1011_v53, %s2676_s16  ;;  %v852_v53 = vsel %vm2995_vm11, %v848_v46, 0 }
 0x13b   : > { %v2429_v60 = vcombine.high %v851_v52, %v852_v53  ;;  %v2428_v63 = vcombine.low %v851_v52, %v852_v53 }
 0x174   : > { %v623_v11 = vpop.permute.xlu0 %622  ;;  %v627_v15 = vpop.permute.xlu1 %626 }
 0x178   : > { %v625_v20 = vpop.permute.xlu0 %624  ;;  %v704_v4 = vpop.permute.xlu1 %703 }
 0x179   : > { %v634_v22 = vsel %vm628_vm9, %v625_v20, %v627_v15  ;;  %v633_v23 = vsel %vm628_vm9, %v623_v11, %v625_v20 }
 0x17a   : > { %649 = vmatprep.subr.bf16.mxu0 %v634_v22 }
 0x17b   : > { %650 = vmatpush1.bf16.msra.mxu0 %v633_v23 }
 0x17c   : > { %v702_v29 = vpop.permute.xlu0 %701  ;;  %727 = vmatprep.subr.bf16.mxu0 %v713_v25 }
 0x17d   : > { %v715_v32 = vsel %vm711_vm6, %v702_v29, %v704_v4 }
 0x17e   : > { %2422 = vmatmul.mubr.msk.bf16.vlgmr.msra.gmra.mrb[0].mxu0 %vm641_vm0, %v2658_v24 }
 0x17f   : > { %728 = vmatpush1.bf16.msra.mxu0 %v712_v14  ;;  %759 = vmatprep.mubr.bf16.mxu0 %v2672_v2 }
 0x180   : > { %v700_v37 = vpop.permute.xlu0 %699  ;;  %729 = vmatprep.subr.bf16.mxu0 %v715_v32 }
 0x181   : > { %v714_v41 = vsel %vm711_vm6, %v700_v37, %v702_v29  ;;  %v708_v42 = vpop.permute.xlu1 %707 }
 0x183   : > { %730 = vmatpush1.bf16.msra.mxu0 %v714_v41 }
 0x184   : > { %v710_v31 = vpop.permute.xlu0 %709 }
 0x185   : > { %v706_v48 = vpop.permute.xlu1 %705  ;;  %v717_v35 = vsel %vm711_vm6, %v708_v42, %v710_v31 }
 0x186   : > { %v716_v49 = vsel %vm711_vm6, %v706_v48, %v708_v42  ;;  %731 = vmatprep.subr.bf16.mxu0 %v717_v35 }
 0x187   : > { %732 = vmatpush1.bf16.msra.mxu0 %v716_v49  ;;  %v1004_v49 = vld [vmem:[#allocation2] sm:$0xff] }
 0x188   : > { %933 = vmatprep.subr.bf16.mxu0 %v2427_v50  ;;  %v873_v55 = vpop.permute.xlu0 %872  ;;  %v1317_v50 = vsel %vm3052_vm13, 65537, %v2672_v2 }
 0x189   : > { %v880_v57 = vrot.slane %v873_v55, 4  ;;  %v875_v58 = vpop.permute.xlu1 %874  ;;  %v1321_v53 = vrot.slane %v1317_v50, %v2767_v7 }
 0x18a   : > { %v881_v59 = vrot.slane %v875_v58, 4  ;;  %2424 = vmatmul.mubr.msk.bf16.vlgmr.msra.gmra.mrb[0].mxu0 %vm641_vm0, %v2659_v51 }
 0x18b   : > { %934 = vmatpush1.bf16.msra.mxu0 %v2426_v56  ;;  %965 = vmatprep.mubr.bf16.mxu0 %v2672_v2 }
 0x18c   : > { %v884_v61 = vsel %vm556_vm5, %v880_v57, %v881_v59  ;;  %935 = vmatprep.subr.bf16.mxu0 %v2429_v60  ;;  %v877_v62 = vpop.permute.xlu0 %876 }
 0x18d   : > { %v882_v36 = vrot.slane %v877_v62, 4  ;;  %v879_v44 = vpop.permute.xlu1 %878  ;;  %v885_v5 = vsel %vm357_vm1, %v884_v61, %v875_v58  ;;  %v1325_v58 = vrot.slane %v1317_v50, %v2770_v8 }
 0x18e   : > { %v883_v1 = vrot.slane %v879_v44, 4  ;;  %v890_v10 = vsel %vm3007_vm14, %v885_v5, 0 }
 0x18f   : > { %936 = vmatpush1.bf16.msra.mxu0 %v2428_v63 }
 0x190   : > { %v886_v6 = vsel %vm556_vm5, %v882_v36, %v883_v1 }
 0x191   : > { %v887_v9 = vsel %vm357_vm1, %v886_v6, %v879_v44 }
 0x192   : > { %v891_v11 = vsel %vm3007_vm14, %v887_v9, 0 }
 0x193   : > { %v2430_v15 = vcombine.low %v890_v10, %v891_v11  ;;  %v2431_v16 = vcombine.high %v890_v10, %v891_v11 }
 0x195   : > { %937 = vmatprep.subr.bf16.mxu0 %v2431_v16 }
 0x196   : > { %938 = vmatpush1.bf16.msra.mxu0 %v2430_v15 }
 0x199   : > { %2435 = vmatmul.mubr.msk.bf16.vlgmr.msra.gmra.mrb[0].mxu0 %vm641_vm0, %v2660_v3 }
 0x19d   : > { %v985_v17 = vpop.permute.xlu0 %984 }
 0x19e   : > { %v990_v21 = vpop.permute.xlu1 %989 }
 0x1a1   : > { %v1120_v20 = vpop.permute.xlu0 %1119 }
 0x1a2   : > { %vm1124_vm5 = vcmp.ne.s16.totalorder %v1120_v20, 0  ;;  %v1118_v22 = vpop.permute.xlu1 %1117 }
 0x1a3   : > { %v1127_v0 = vsel %vm1124_vm5, %v3090_v18, 0  ;;  %vm1122_vm11 = vcmp.ne.s16.totalorder %v1118_v22, 0  ;;  %v1121_v27 = vsel %vm628_vm9, %v1118_v22, %v1120_v20 }
 0x1a4   : > { %1142 = vrot.lane.b32.xlu1 %v1127_v0, %s2677_s17  ;;  %vm1123_vm15 = vcmp.ne.s16.totalorder %v1121_v27, 0 }
 0x1a5   : > { %v1038_v13 = vpop.permute.xlu0 %1037 }
 0x1a6   : > { %v1036_v23 = vpop.permute.xlu1 %1035  ;;  %vm1042_vm2 = vcmp.ne.s16.totalorder %v1038_v13, 0 }
 0x1a7   : > { %v1039_v39 = vsel %vm388_vm7, %v1036_v23, %v1038_v13  ;;  %vm1040_vm10 = vcmp.ne.s16.totalorder %v1036_v23, 0 }
 0x1a8   : > { %1018 = vrot.lane.b32.xlu1 %v1015_v47, %s2676_s16  ;;  %vm1041_vm14 = vcmp.ne.s16.totalorder %v1039_v39, 0  ;;  %v1043_v52 = vsel %vm1040_vm10, %v1004_v49, 0  ;;  %s2684_s16 = smov 64  }
 0x1a9   : > { %v1057_v40 = vpop.permute.xlu0 %1056 }
 0x1aa   : > { %v1055_v4 = vpop.permute.xlu1 %1054  ;;  %vm1061_vm5 = vcmp.ne.s16.totalorder %v1057_v40, 0 }
 0x1ab   : > { %v1058_v41 = vsel %vm424_vm8, %v1055_v4, %v1057_v40  ;;  %vm1059_vm12 = vcmp.ne.s16.totalorder %v1055_v4, 0 }
 0x1ac   : > { %vm1060_vm7 = vcmp.ne.s16.totalorder %v1058_v41, 0  ;;  %v1062_v57 = vsel %vm1059_vm12, %v1004_v49, 0 }
 0x1ad   : > { %v1350_v46 = vpop.permute.xlu0 %1349 }
 0x1ae   : > { %v1348_v42 = vpop.permute.xlu1 %1347  ;;  %vm1355_vm13 = vcmp.ne.s16.totalorder %v1350_v46, 0 }
 0x1af   : > { %v1358_v61 = vsel %vm1355_vm13, %v3090_v18, 0 }
 0x1b1   : > { %v1371_v55 = vpop.permute.xlu0 %1370 }
 0x1b2   : > { %v1369_v48 = vpop.permute.xlu1 %1368 }
 0x1b3   : > { %v1372_v7 = vsel %vm711_vm6, %v1369_v48, %v1371_v55  ;;  %vm1373_vm10 = vcmp.ne.s16.totalorder %v1369_v48, 0 }
 0x1b5   : > { %v1100_v33 = vpop.permute.xlu0 %1099 }
 0x1b6   : > { %v1098_v56 = vpop.permute.xlu1 %1097 }
 0x1b7   : > { %v1101_v6 = vsel %vm464_vm4, %v1098_v56, %v1100_v33 }
 0x1b9   : > { %v1017_v63 = vpop.permute.xlu0 %1016 }
 0x1ba   : > { %vm1021_vm13 = vcmp.ne.s16.totalorder %v1017_v63, 0 }
 0x1bb   : > { %v1024_v16 = vsel %vm1021_vm13, %v1004_v49, 0  ;;  %vm2291_vm13 = vcmask 326656  }
 0x216   : > { %v3125_v59 = vpop.permute.xlu1 %1142 }
 0x21a   : > { %v1019_v36 = vpop.permute.xlu1 %1018 }
 0x21b   : > { %v1020_v5 = vsel %vm357_vm1, %v1017_v63, %v1019_v36  ;;  %vm1104_vm1 = vcmp.ne.s16.totalorder %v1100_v33, 0  ;;  %v1493_v33 = vld [vmem:[%s3342_s4 + $0x8] sm:$0xff] }
 0x21c   : > { %vm1022_vm12 = vcmp.ne.s16.totalorder %v1020_v5, 0 }
 0x26c   : > { %v967_v24 = vpop.f32.mrb[0].mxu0 }
 0x26d   : > { %v992_v25 = vadd.f32 %v985_v17, %v967_v24  ;;  %v969_v26 = vpop.f32.mrb[1].mxu0 }
 0x26e   : > { %v993_v28 = vadd.f32 %v985_v17, %v969_v26  ;;  %v971_v29 = vpop.f32.mrb[2].mxu0 }
 0x26f   : > { %v994_v19 = vadd.f32 %v990_v21, %v971_v29  ;;  %v973_v12 = vpop.f32.mrb[3].mxu0  ;;  %v996_v14 = vmax.f32 %v992_v25, 0.0 }
 0x270   : > { %v995_v30 = vadd.f32 %v990_v21, %v973_v12  ;;  %v997_v54 = vmax.f32 %v993_v28, 0.0 }
 0x271   : > { %v998_v32 = vmax.f32 %v994_v19, 0.0 }
 0x272   : > { %v999_v34 = vmax.f32 %v995_v30, 0.0 }
 0x273   : > { %v3098_v37 = vpack.c.bf16 %v998_v32, %v996_v14 }
 0x274   : > { %v3100_v38 = vpack.c.bf16 %v999_v34, %v997_v54 }
 0x275   : > { %1130 = vrot.lane.b32.xlu1 %v3098_v37, %s2673_s13  ;;  %v1125_v43 = vsel %vm1122_vm11, %v3098_v37, 0  ;;  %v1044_v31 = vsel %vm1041_vm14, %v3098_v37, 0  ;;  %v1063_v45 = vsel %vm1060_vm7, %v3098_v37, 0  ;;  %vm1351_vm11 = vcmask 130048  }
 0x276   : > { %1132 = vrot.lane.b32.xlu0 %v3100_v38, %s2673_s13  ;;  %v1126_v35 = vsel %vm1123_vm15, %v3100_v38, 0  ;;  %v1045_v51 = vsel %vm1042_vm2, %v3100_v38, 0  ;;  %v1064_v60 = vsel %vm1061_vm5, %v3100_v38, 0  ;;  %vm1353_vm14 = vcmp.ne.s16.totalorder %v1348_v42, 0 }
 0x277   : > { %v1352_v8 = vsel %vm1351_vm11, %v1348_v42, %v1350_v46  ;;  %vm1374_vm7 = vcmp.ne.s16.totalorder %v1372_v7, 0  ;;  %v1356_v62 = vsel %vm1353_vm14, %v3098_v37, 0  ;;  %vm1375_vm2 = vcmp.ne.s16.totalorder %v1371_v55, 0 }
 0x278   : > { %vm1354_vm15 = vcmp.ne.s16.totalorder %v1352_v8, 0  ;;  %v1377_v44 = vsel %vm1374_vm7, %v3100_v38, 0  ;;  %v1378_v9 = vsel %vm1375_vm2, %v3090_v18, 0  ;;  %v1376_v10 = vsel %vm1373_vm10, %v3098_v37, 0 }
 0x279   : > { %1138 = vrot.lane.b32.xlu1 %v1125_v43, %s2677_s17  ;;  %v1357_v1 = vsel %vm1354_vm15, %v3100_v38, 0  ;;  %vm1103_vm5 = vcmp.ne.s16.totalorder %v1101_v6, 0  ;;  %vm1102_vm14 = vcmp.ne.s16.totalorder %v1098_v56, 0  ;;  %v1025_v11 = vsel %vm1022_vm12, %v3098_v37, 0 }
 0x27a   : > { %1070 = vrot.lane.b32.xlu0 %v1044_v31, %s2673_s13  ;;  %v1106_v15 = vsel %vm1103_vm5, %v3098_v37, 0  ;;  %v1105_v3 = vsel %vm1102_vm14, %v1004_v49, 0  ;;  %vm1023_vm7 = vcmp.ne.s16.totalorder %v1019_v36, 0  ;;  %v1107_v17 = vsel %vm1104_vm1, %v3100_v38, 0 }
 0x27b   : > { %v1026_v20 = vsel %vm1023_vm7, %v3100_v38, 0  ;;  %vm1330_vm15 = vcmask 121856   ;;  %vm2288_vm5 = vcmask 261120   ;;  %vm2296_vm14 = vcmask 457728  }
 0x27c   : > { %vm2299_vm1 = vcmask 523264  }
 0x27d   : > { %1081 = vrot.lane.b32.xlu1 %v1063_v45, %s2677_s17 }
 0x27e   : > { %1140 = vrot.lane.b32.xlu0 %v1126_v35, %s2677_s17 }
 0x281   : > { %1072 = vrot.lane.b32.xlu1 %v1045_v51, %s2673_s13 }
 0x282   : > { %1068 = vrot.lane.b32.xlu0 %v1043_v52, %s2673_s13 }
 0x285   : > { %1079 = vrot.lane.b32.xlu1 %v1062_v57, %s2677_s17 }
 0x286   : > { %1326 = vrot.lane.b32.xlu0 %v1321_v53, %s2681_s12 }
 0x289   : > { %1328 = vrot.lane.b32.xlu1 %v1325_v58, %s2681_s12 }
 0x28a   : > { %1083 = vrot.lane.b32.xlu0 %v1064_v60, %s2677_s17 }
 0x28d   : > { %1386 = vrot.lane.b32.xlu1 %v1358_v61, %s2673_s13 }
 0x28e   : > { %1382 = vrot.lane.b32.xlu0 %v1356_v62, %s2673_s13 }
 0x291   : > { %1395 = vrot.lane.b32.xlu1 %v1377_v44, %s2677_s17 }
 0x292   : > { %1384 = vrot.lane.b32.xlu0 %v1357_v1, %s2673_s13 }
 0x295   : > { %1393 = vrot.lane.b32.xlu1 %v1376_v10, %s2677_s17 }
 0x296   : > { %1397 = vrot.lane.b32.xlu0 %v1378_v9, %s2677_s17  ;;  %s2686_s17 = smov 8  }
 0x299   : > { %1243 = vrot.lane.b32.xlu1 %v1025_v11, %s2679_s19  ;;  %v2661_v11 = vld [vmem:[%s3341_s3 + $0x8] sm:$0xff]  }
 0x29a   : > { %1159 = vrot.lane.b32.xlu0 %v1106_v15, %s2678_s18 }
 0x29d   : > { %1241 = vrot.lane.b32.xlu1 %v1024_v16, %s2679_s19 }
 0x29e   : > { %1157 = vrot.lane.b32.xlu0 %v1105_v3, %s2678_s18 }
 0x2a1   : > { %1161 = vrot.lane.b32.xlu1 %v1107_v17, %s2678_s18 }
 0x2a2   : > { %1245 = vrot.lane.b32.xlu0 %v1026_v20, %s2679_s19 }
 0x2e7   : > { %v1131_v0 = vpop.permute.xlu1 %1130 }
 0x2e8   : > { %v1133_v47 = vpop.permute.xlu0 %1132  ;;  %1163 = vrot.lane.b32.xlu1 %v1131_v0, %s2678_s18 }
 0x2e9   : > { %1167 = vrot.lane.b32.xlu0 %v1133_v47, %s2678_s18  ;;  %v1134_v22 = vsel %vm464_vm4, %v1131_v0, %v1133_v47 }
 0x2eb   : > { %v1139_v21 = vpop.permute.xlu1 %1138 }
 0x2ec   : > { %v1071_v23 = vpop.permute.xlu0 %1070  ;;  %1165 = vrot.lane.b32.xlu1 %v1134_v22, %s2678_s18 }
 0x2ed   : > { %1169 = vrot.lane.b32.xlu0 %v1139_v21, %s2678_s18 }
 0x2ef   : > { %v1082_v24 = vpop.permute.xlu1 %1081 }
 0x2f0   : > { %v1141_v25 = vpop.permute.xlu0 %1140 }
 0x2f1   : > { %v1145_v19 = vsel %vm486_vm3, %v1141_v25, %v3125_v59  ;;  %v1144_v30 = vsel %vm486_vm3, %v1139_v21, %v1141_v25  ;;  %v2662_v25 = vld [vmem:[%s3341_s3] sm:$0xff]  }
 0x2f3   : > { %v1073_v26 = vpop.permute.xlu1 %1072 }
 0x2f4   : > { %v1069_v28 = vpop.permute.xlu0 %1068  ;;  %1251 = vrot.lane.b32.xlu1 %v1073_v26, %s2679_s19  ;;  %v1075_v41 = vsel %vm464_vm4, %v1071_v23, %v1073_v26 }
 0x2f5   : > { %v1074_v29 = vsel %vm464_vm4, %v1069_v28, %v1071_v23 }
 0x2f6   : > { %1247 = vrot.lane.b32.xlu0 %v1074_v29, %s2679_s19 }
 0x2f7   : > { %v1080_v13 = vpop.permute.xlu1 %1079 }
 0x2f8   : > { %v1327_v12 = vpop.permute.xlu0 %1326  ;;  %1173 = vrot.lane.b32.xlu1 %v1145_v19, %s2678_s18  ;;  %v1085_v4 = vsel %vm486_vm3, %v1080_v13, %v1082_v24 }
 0x2f9   : > { %vm1332_vm12 = vcmp.ne.s16.totalorder %v1327_v12, 0 }
 0x2fa   : > { %1171 = vrot.lane.b32.xlu0 %v1144_v30, %s2678_s18  ;;  %v1335_v48 = vsel %vm1332_vm12, %v3098_v37, 0  ;;  %v1492_v37 = vld [vmem:[%s3342_s4] sm:$0xff]  ;;  %s2687_s18 = smov 24  }
 0x2fb   : > { %v1329_v14 = vpop.permute.xlu1 %1328 }
 0x2fc   : > { %vm1334_vm2 = vcmp.ne.s16.totalorder %v1329_v14, 0  ;;  %v1084_v32 = vpop.permute.xlu0 %1083  ;;  %1253 = vrot.lane.b32.xlu1 %v1085_v4, %s2679_s19  ;;  %v1331_v34 = vsel %vm1330_vm15, %v1327_v12, %v1329_v14 }
 0x2fd   : > { %v1337_v54 = vsel %vm1334_vm2, %v3090_v18, 0  ;;  %vm1333_vm10 = vcmp.ne.s16.totalorder %v1331_v34, 0  ;;  %v1086_v42 = vsel %vm486_vm3, %v1082_v24, %v1084_v32 }
 0x2fe   : > { %1257 = vrot.lane.b32.xlu0 %v1084_v32, %s2679_s19  ;;  %v1336_v18 = vsel %vm1333_vm10, %v3100_v38, 0 }
 0x2ff   : > { %v1387_v39 = vpop.permute.xlu1 %1386 }
 0x300   : > { %v1383_v40 = vpop.permute.xlu0 %1382  ;;  %1416 = vrot.lane.b32.xlu1 %v1337_v54, %s2675_s15 }
 0x302   : > { %1249 = vrot.lane.b32.xlu0 %v1075_v41, %s2679_s19 }
 0x303   : > { %v1396_v43 = vpop.permute.xlu1 %1395 }
 0x304   : > { %v1385_v27 = vpop.permute.xlu0 %1384  ;;  %1255 = vrot.lane.b32.xlu1 %v1086_v42, %s2679_s19  ;;  %s2688_s19 = smov 40  }
 0x305   : > { %v1389_v31 = vsel %vm464_vm4, %v1385_v27, %v1387_v39  ;;  %v1388_v35 = vsel %vm464_vm4, %v1383_v40, %v1385_v27  ;;  %vm1545_vm4 = vcmask 1046528  }
 0x306   : > { %1414 = vrot.lane.b32.xlu0 %v1336_v18, %s2675_s15 }
 0x307   : > { %v1394_v45 = vpop.permute.xlu1 %1393 }
 0x308   : > { %v1398_v46 = vpop.permute.xlu0 %1397  ;;  %1420 = vrot.lane.b32.xlu1 %v1389_v31, %s2675_s15  ;;  %v1399_v57 = vsel %vm486_vm3, %v1394_v45, %v1396_v43 }
 0x309   : > { %v1400_v52 = vsel %vm486_vm3, %v1396_v43, %v1398_v46 }
 0x30a   : > { %1412 = vrot.lane.b32.xlu0 %v1335_v48, %s2675_s15 }
 0x30b   : > { %v1244_v49 = vpop.permute.xlu1 %1243 }
 0x30c   : > { %v1160_v50 = vpop.permute.xlu0 %1159  ;;  %1418 = vrot.lane.b32.xlu1 %v1388_v35, %s2675_s15 }
 0x30e   : > { %1422 = vrot.lane.b32.xlu0 %v1387_v39, %s2675_s15 }
 0x30f   : > { %v1242_v38 = vpop.permute.xlu1 %1241 }
 0x310   : > { %v1259_v51 = vsel %vm711_vm6, %v1242_v38, %v1244_v49  ;;  %1428 = vrot.lane.b32.xlu1 %v1398_v46, %s2675_s15  ;;  %v1158_v53 = vpop.permute.xlu0 %1157  ;;  %v1516_v38 = vld [vmem:[%s3344_s6] sm:$0xff] }
 0x311   : > { %v1175_v58 = vsel %vm628_vm9, %v1158_v53, %v1160_v50 }
 0x312   : > { %1426 = vrot.lane.b32.xlu0 %v1400_v52, %s2675_s15 }
 0x313   : > { %v1162_v55 = vpop.permute.xlu1 %1161 }
 0x314   : > { %1496 = vperm.xlu1 %2655, %v1492_v37   ;;  %v1176_v56 = vsel %vm628_vm9, %v1160_v50, %v1162_v55  ;;  %v1246_v59 = vpop.permute.xlu0 %1245 }
 0x315   : > { %1190 = vmatprep.subr.bf16.mxu1 %v1176_v56  ;;  %v1260_v15 = vsel %vm711_vm6, %v1244_v49, %v1246_v59 }
 0x316   : > { %1424 = vrot.lane.b32.xlu0 %v1399_v57, %s2675_s15  ;;  %1191 = vmatpush1.bf16.msra.mxu1 %v1175_v58  ;;  %s2690_s15 = smov 56  }
 0x31a   : > { %1501 = vperm.xlu0 %2654, %v1493_v33  }
 0x35a   : > { %v1164_v60 = vpop.permute.xlu1 %1163 }
 0x35b   : > { %v1168_v7 = vpop.permute.xlu0 %1167 }
 0x35e   : > { %v1166_v61 = vpop.permute.xlu1 %1165 }
 0x35f   : > { %v1178_v8 = vsel %vm628_vm9, %v1166_v61, %v1168_v7  ;;  %v1177_v62 = vsel %vm628_vm9, %v1164_v60, %v1166_v61  ;;  %v1170_v63 = vpop.permute.xlu0 %1169 }
 0x360   : > { %1192 = vmatprep.subr.bf16.mxu1 %v1178_v8 }
 0x361   : > { %1193 = vmatpush1.bf16.msra.mxu1 %v1177_v62 }
 0x366   : > { %v1252_v36 = vpop.permute.xlu1 %1251 }
 0x368   : > { %v1248_v44 = vpop.permute.xlu0 %1247 }
 0x36a   : > { %v1174_v1 = vpop.permute.xlu1 %1173 }
 0x36c   : > { %v1172_v5 = vpop.permute.xlu0 %1171 }
 0x36d   : > { %v1180_v6 = vsel %vm628_vm9, %v1172_v5, %v1174_v1  ;;  %v1179_v9 = vsel %vm628_vm9, %v1170_v63, %v1172_v5  ;;  %vm2279_vm9 = vcmask 64512  }
 0x36e   : > { %1194 = vmatprep.subr.bf16.mxu1 %v1180_v6  ;;  %v1254_v10 = vpop.permute.xlu1 %1253 }
 0x36f   : > { %1195 = vmatpush1.bf16.msra.mxu1 %v1179_v9 }
 0x370   : > { %v1258_v16 = vpop.permute.xlu0 %1257  ;;  %1274 = vmatprep.subr.bf16.mxu1 %v1260_v15 }
 0x372   : > { %v1417_v3 = vpop.permute.xlu1 %1416  ;;  %2439 = vmatmul.mubr.msk.bf16.vlgmr.msra.gmra.mrb[0].mxu1 %vm641_vm0, %v2661_v11 }
 0x373   : > { %1275 = vmatpush1.bf16.msra.mxu1 %v1259_v51  ;;  %1306 = vmatprep.mubr.bf16.mxu1 %v2672_v2  ;;  %v1517_v51 = vld [vmem:[%s3344_s6 + $0x8] sm:$0x7f] }
 0x374   : > { %v1250_v17 = vpop.permute.xlu0 %1249  ;;  %v3245_v52 = vpack.c.bf16 %v1517_v51, %v1516_v38 }
 0x375   : > { %v1261_v20 = vsel %vm711_vm6, %v1248_v44, %v1250_v17  ;;  %v1262_v0 = vsel %vm711_vm6, %v1250_v17, %v1252_v36 }
 0x376   : > { %1276 = vmatprep.subr.bf16.mxu1 %v1262_v0  ;;  %v1256_v47 = vpop.permute.xlu1 %1255 }
 0x377   : > { %1277 = vmatpush1.bf16.msra.mxu1 %v1261_v20  ;;  %v1264_v21 = vsel %vm711_vm6, %v1256_v47, %v1258_v16  ;;  %v1263_v23 = vsel %vm711_vm6, %v1254_v10, %v1256_v47  ;;  %vm2285_vm6 = vcmask 195584  }
 0x378   : > { %v1415_v22 = vpop.permute.xlu0 %1414  ;;  %1278 = vmatprep.subr.bf16.mxu1 %v1264_v21 }
 0x379   : > { %v1431_v26 = vsel %vm424_vm8, %v1415_v22, %v1417_v3 }
 0x37a   : > { %v1421_v24 = vpop.permute.xlu1 %1420 }
 0x37b   : > { %1279 = vmatpush1.bf16.msra.mxu1 %v1263_v23 }
 0x37c   : > { %v1413_v28 = vpop.permute.xlu0 %1412  ;;  %1445 = vmatprep.subr.bf16.mxu1 %v1431_v26 }
 0x37d   : > { %v1430_v29 = vsel %vm424_vm8, %v1413_v28, %v1415_v22 }
 0x37e   : > { %v1419_v13 = vpop.permute.xlu1 %1418  ;;  %2441 = vmatmul.mubr.msk.bf16.vlgmr.msra.gmra.mrb[0].mxu1 %vm641_vm0, %v2662_v25 }
 0x37f   : > { %1446 = vmatpush1.bf16.msra.mxu1 %v1430_v29  ;;  %1477 = vmatprep.mubr.bf16.mxu1 %v2672_v2  ;;  %v1432_v30 = vsel %vm424_vm8, %v1419_v13, %v1421_v24  ;;  %v2663_v2 = vld [vmem:[%s3341_s3 + $0x10] sm:$0xff]  }
 0x380   : > { %v1423_v19 = vpop.permute.xlu0 %1422 }
 0x381   : > { %v1433_v12 = vsel %vm424_vm8, %v1421_v24, %v1423_v19 }
 0x382   : > { %1447 = vmatprep.subr.bf16.mxu1 %v1433_v12  ;;  %v1429_v4 = vpop.permute.xlu1 %1428 }
 0x383   : > { %1448 = vmatpush1.bf16.msra.mxu1 %v1432_v30 }
 0x384   : > { %v1427_v14 = vpop.permute.xlu0 %1426 }
 0x385   : > { %v1435_v32 = vsel %vm424_vm8, %v1427_v14, %v1429_v4 }
 0x386   : > { %1449 = vmatprep.subr.bf16.mxu1 %v1435_v32 }
 0x388   : > { %v1425_v54 = vpop.permute.xlu0 %1424 }
 0x389   : > { %v1434_v34 = vsel %vm424_vm8, %v1425_v54, %v1427_v14  ;;  %vm2682_vm8 = vmmov 1  }
 0x38a   : > { %1450 = vmatpush1.bf16.msra.mxu1 %v1434_v34  ;;  %vm3247_vm3 = vmpackc.low %vm1545_vm4, %vm2682_vm8 }
 0x38b   : > { %2565 = vmatprep.subr.msk.bf16.mxu0 %vm3247_vm3, %v3245_v52  ;;  %2571 = vmatprep.subr.msk.bf16.mxu1 %vm3247_vm3, %v3245_v52 }
 0x38c   : > { %2568 = vmatpush3.bf16.msk.msra.mxu0 %vm3247_vm3, %v3245_v52 }
 0x38d   : > { %2445 = vmatmul.mubr.msk.bf16.vlgmr.msra.gmra.mrb[0].mxu1 %vm641_vm0, %v2663_v2  ;;  %2577 = vmatprep.subr.msk.bf16.mxu0 %vm3247_vm3, %v3245_v52 }
 0x38e   : > { %2574 = vmatpush3.bf16.msk.msra.mxu1 %vm3247_vm3, %v3245_v52 }
 0x38f   : > { %2583 = vmatprep.subr.msk.bf16.mxu1 %vm3247_vm3, %v3245_v52 }
 0x393   : > { %v1497_v39 = vpop.permute.xlu1 %1496 }
 0x399   : > { %v1502_v43 = vpop.permute.xlu0 %1501 }
 0x460   : > { %v1479_v40 = vpop.f32.mrb[0].mxu1 }
 0x461   : > { %v1504_v41 = vadd.f32 %v1497_v39, %v1479_v40  ;;  %v1481_v42 = vpop.f32.mrb[1].mxu1 }
 0x462   : > { %v1505_v27 = vadd.f32 %v1497_v39, %v1481_v42  ;;  %v1483_v18 = vpop.f32.mrb[2].mxu1 }
 0x463   : > { %v1508_v31 = vmax.f32 %v1504_v41, 0.0  ;;  %v1506_v45 = vadd.f32 %v1502_v43, %v1483_v18  ;;  %v1485_v46 = vpop.f32.mrb[3].mxu1 }
 0x464   : > { %v1509_v48 = vmax.f32 %v1505_v27, 0.0  ;;  %v1507_v35 = vadd.f32 %v1502_v43, %v1485_v46 }
 0x465   : > { %1512 = vst [vmem:[%s313_s30] sm:$0xff] %v1508_v31  ;;  %v1510_v49 = vmax.f32 %v1506_v45, 0.0  ;;  %1520 = vrot.lane.b32.xlu1 %v1508_v31, %s2674_s14 }
 0x466   : > { %1513 = vst [vmem:[%s313_s30 + $0x8] sm:$0xff] %v1509_v48  ;;  %v1511_v50 = vmax.f32 %v1507_v35, 0.0 }
 0x467   : > { %1514 = vst [vmem:[%s313_s30 + $0x10] sm:$0xff] %v1510_v49  ;;  %1522 = vrot.lane.b32.xlu0 %v1510_v49, %s2674_s14 }
 0x468   : > { %1515 = vst [vmem:[%s313_s30 + $0x18] sm:$0xff] %v1511_v50 }
 0x469   : > { %1875 = vrot.lane.b32.xlu1 %v1509_v48, %s2674_s14 }
 0x46b   : > { %1877 = vrot.lane.b32.xlu0 %v1511_v50, %s2674_s14  ;;  %s2683_s14 = smov 96  }
 0x4d7   : > { %v1521_v53 = vpop.permute.xlu1 %1520 }
 0x4d8   : > { %v1526_v55 = vmax.f32 %v1508_v31, %v1521_v53 }
 0x4d9   : > { %v1523_v56 = vpop.permute.xlu0 %1522 }
 0x4da   : > { %v1527_v57 = vmax.f32 %v1510_v49, %v1523_v56  ;;  %1530 = vrot.lane.b32.xlu1 %v1526_v55, %s2673_s13 }
 0x4db   : > { %v1876_v58 = vpop.permute.xlu1 %1875 }
 0x4dc   : > { %v1881_v33 = vmax.f32 %v1509_v48, %v1876_v58  ;;  %1532 = vrot.lane.b32.xlu0 %v1527_v57, %s2673_s13 }
 0x4dd   : > { %v1878_v59 = vpop.permute.xlu0 %1877 }
 0x4de   : > { %v1882_v60 = vmax.f32 %v1511_v50, %v1878_v59  ;;  %1885 = vrot.lane.b32.xlu1 %v1881_v33, %s2673_s13 }
 0x4e0   : > { %1887 = vrot.lane.b32.xlu0 %v1882_v60, %s2673_s13  ;;  %s2685_s13 = smov 32  }
 0x54c   : > { %v1531_v7 = vpop.permute.xlu1 %1530 }
 0x54d   : > { %v1536_v61 = vmax.f32 %v1526_v55, %v1531_v7 }
 0x54e   : > { %v1533_v8 = vpop.permute.xlu0 %1532 }
 0x54f   : > { %v1537_v62 = vmax.f32 %v1527_v57, %v1533_v8  ;;  %1624 = vrot.lane.b32.xlu1 %v1536_v61, %s2683_s14  ;;  %2511 = vmatprep.mubr.msk.f32.mxu0 %vm1330_vm15, %v1536_v61 }
 0x550   : > { %v1886_v63 = vpop.permute.xlu1 %1885 }
 0x551   : > { %1626 = vrot.lane.b32.xlu0 %v1537_v62, %s2683_s14  ;;  %2512 = vmatmul.mubr.msk.f32.vlgmr.msra.gmra.mrb[4].mxu0 %vm1330_vm15, %v1537_v62  ;;  %v1891_v44 = vmax.f32 %v1881_v33, %v1886_v63 }
 0x552   : > { %2580 = vmatpush3.bf16.msk.msra.mxu0 %vm3247_vm3, %v3245_v52  ;;  %v1888_v36 = vpop.permute.xlu0 %1887 }
 0x553   : > { %1707 = vrot.lane.b32.xlu1 %v1536_v61, %s2684_s16  ;;  %2589 = vmatprep.subr.msk.bf16.mxu0 %vm3247_vm3, %v3245_v52  ;;  %v1892_v1 = vmax.f32 %v1882_v60, %v1888_v36 }
 0x555   : > { %1709 = vrot.lane.b32.xlu0 %v1537_v62, %s2684_s16 }
 0x557   : > { %1790 = vrot.lane.b32.xlu1 %v1536_v61, %s2685_s13 }
 0x559   : > { %1792 = vrot.lane.b32.xlu0 %v1537_v62, %s2685_s13 }
 0x55b   : > { %1974 = vrot.lane.b32.xlu1 %v1891_v44, %s2683_s14 }
 0x55d   : > { %1976 = vrot.lane.b32.xlu0 %v1892_v1, %s2683_s14 }
 0x55f   : > { %2057 = vrot.lane.b32.xlu1 %v1891_v44, %s2684_s16 }
 0x561   : > { %2059 = vrot.lane.b32.xlu0 %v1892_v1, %s2684_s16 }
 0x563   : > { %2140 = vrot.lane.b32.xlu1 %v1891_v44, %s2685_s13 }
 0x565   : > { %2142 = vrot.lane.b32.xlu0 %v1892_v1, %s2685_s13 }
 0x5c1   : > { %v1625_v5 = vpop.permute.xlu1 %1624 }
 0x5c2   : > { %2518 = vmatprep.mubr.msk.f32.mxu1 %vm1330_vm15, %v1625_v5 }
 0x5c3   : > { %v1627_v6 = vpop.permute.xlu0 %1626 }
 0x5c4   : > { %2519 = vmatmul.mubr.msk.f32.vlgmr.msra.gmra.mrb[4].mxu1 %vm1330_vm15, %v1627_v6 }
 0x5c5   : > { %v1708_v9 = vpop.permute.xlu1 %1707  ;;  %2586 = vmatpush3.bf16.msk.msra.mxu1 %vm3247_vm3, %v3245_v52 }
 0x5c6   : > { %2525 = vmatprep.mubr.msk.f32.mxu0 %vm1330_vm15, %v1708_v9  ;;  %2595 = vmatprep.subr.msk.bf16.mxu1 %vm3247_vm3, %v3245_v52 }
 0x5c7   : > { %v1710_v10 = vpop.permute.xlu0 %1709 }
 0x5c8   : > { %2526 = vmatmul.mubr.msk.f32.vlgmr.msra.gmra.mrb[6].mxu0 %vm1330_vm15, %v1710_v10 }
 0x5c9   : > { %2592 = vmatpush3.bf16.msk.msra.mxu0 %vm3247_vm3, %v3245_v52  ;;  %2539 = vmatprep.mubr.msk.f32.mxu0 %vm1330_vm15, %v1891_v44  ;;  %v1791_v11 = vpop.permute.xlu1 %1790 }
 0x5ca   : > { %2532 = vmatprep.mubr.msk.f32.mxu1 %vm1330_vm15, %v1791_v11  ;;  %2601 = vmatprep.subr.msk.bf16.mxu0 %vm3247_vm3, %v3245_v52 }
 0x5cb   : > { %v1793_v15 = vpop.permute.xlu0 %1792 }
 0x5cc   : > { %2533 = vmatmul.mubr.msk.f32.vlgmr.msra.gmra.mrb[6].mxu1 %vm1330_vm15, %v1793_v15  ;;  %2540 = vmatmul.mubr.msk.f32.vlgmr.msra.gmra.mrb[8].mxu0 %vm1330_vm15, %v1892_v1 }
 0x5cd   : > { %2598 = vmatpush3.bf16.msk.msra.mxu1 %vm3247_vm3, %v3245_v52  ;;  %v1975_v16 = vpop.permute.xlu1 %1974  ;;  %2604 = vmatpush3.bf16.msk.msra.mxu0 %vm3247_vm3, %v3245_v52 }
 0x5ce   : > { %2546 = vmatprep.mubr.msk.f32.mxu1 %vm1330_vm15, %v1975_v16  ;;  %2607 = vmatprep.subr.msk.bf16.mxu1 %vm3247_vm3, %v3245_v52 }
 0x5cf   : > { %v1977_v3 = vpop.permute.xlu0 %1976 }
 0x5d0   : > { %2547 = vmatmul.mubr.msk.f32.vlgmr.msra.gmra.mrb[8].mxu1 %vm1330_vm15, %v1977_v3 }
 0x5d1   : > { %v2058_v17 = vpop.permute.xlu1 %2057  ;;  %2610 = vmatpush3.bf16.msk.msra.mxu1 %vm3247_vm3, %v3245_v52 }
 0x5d2   : > { %2553 = vmatprep.mubr.msk.f32.mxu0 %vm1330_vm15, %v2058_v17 }
 0x5d3   : > { %v2060_v20 = vpop.permute.xlu0 %2059 }
 0x5d4   : > { %2554 = vmatmul.mubr.msk.f32.vlgmr.msra.gmra.mrb[10].mxu0 %vm1330_vm15, %v2060_v20 }
 0x5d5   : > { %v2141_v0 = vpop.permute.xlu1 %2140 }
 0x5d6   : > { %2560 = vmatprep.mubr.msk.f32.mxu1 %vm1330_vm15, %v2141_v0 }
 0x5d7   : > { %v2143_v47 = vpop.permute.xlu0 %2142 }
 0x5d8   : > { %2561 = vmatmul.mubr.msk.f32.vlgmr.msra.gmra.mrb[10].mxu1 %vm1330_vm15, %v2143_v47 }
 0x624   : > { %v2513_v21 = vpop.f32.mrb[4].mxu0 }
 0x625   : > { %v1615_v22 = vpop.f32.mrb[5].mxu0 }
 0x697   : > { %v2520_v23 = vpop.f32.mrb[4].mxu1 }
 0x698   : > { %2227 = vrot.lane.b32.xlu0 %v2520_v23, %s2686_s17  ;;  %v1698_v24 = vpop.f32.mrb[5].mxu1 }
 0x699   : > { %2225 = vrot.lane.b32.xlu1 %v1698_v24, %s2686_s17 }
 0x69b   : > { %v2527_v25 = vpop.f32.mrb[6].mxu0 }
 0x69c   : > { %2235 = vrot.lane.b32.xlu0 %v2527_v25, %s2680_s24  ;;  %v1781_v26 = vpop.f32.mrb[7].mxu0 }
 0x69d   : > { %2233 = vrot.lane.b32.xlu1 %v1781_v26, %s2680_s24  ;;  %s2689_s24 = smov 48  }
 0x69f   : > { %v2534_v28 = vpop.f32.mrb[6].mxu1  ;;  %v2541_v29 = vpop.f32.mrb[8].mxu0 }
 0x6a0   : > { %v1965_v13 = vpop.f32.mrb[9].mxu0  ;;  %2243 = vrot.lane.b32.xlu0 %v2534_v28, %s2687_s18  ;;  %v1864_v19 = vpop.f32.mrb[7].mxu1 }
 0x6a1   : > { %2241 = vrot.lane.b32.xlu1 %v1864_v19, %s2687_s18 }
 0x6a3   : > { %v2548_v12 = vpop.f32.mrb[8].mxu1 }
 0x6a4   : > { %2251 = vrot.lane.b32.xlu0 %v2541_v29, %s2685_s13  ;;  %v2048_v30 = vpop.f32.mrb[9].mxu1 }
 0x6a5   : > { %2249 = vrot.lane.b32.xlu1 %v1965_v13, %s2685_s13 }
 0x6a7   : > { %v2555_v4 = vpop.f32.mrb[10].mxu0 }
 0x6a8   : > { %2259 = vrot.lane.b32.xlu0 %v2548_v12, %s2688_s19  ;;  %v2131_v14 = vpop.f32.mrb[11].mxu0 }
 0x6a9   : > { %2257 = vrot.lane.b32.xlu1 %v2048_v30, %s2688_s19 }
 0x6ab   : > { %v2562_v32 = vpop.f32.mrb[10].mxu1 }
 0x6ac   : > { %2267 = vrot.lane.b32.xlu0 %v2555_v4, %s2689_s24  ;;  %v2214_v54 = vpop.f32.mrb[11].mxu1 }
 0x6ad   : > { %2265 = vrot.lane.b32.xlu1 %v2131_v14, %s2689_s24 }
 0x6b0   : > { %2275 = vrot.lane.b32.xlu0 %v2562_v32, %s2690_s15 }
 0x6b1   : > { %2273 = vrot.lane.b32.xlu1 %v2214_v54, %s2690_s15 }
 0x70a   : > { %v2228_v34 = vpop.permute.xlu0 %2227 }
 0x70b   : > { %v2226_v2 = vpop.permute.xlu1 %2225  ;;  %v2281_v45 = vsel %vm2279_vm9, %v2513_v21, %v2228_v34 }
 0x70c   : > { %v2280_v46 = vsel %vm2279_vm9, %v1615_v22, %v2226_v2 }
 0x70e   : > { %v2236_v39 = vpop.permute.xlu0 %2235 }
 0x70f   : > { %v2234_v40 = vpop.permute.xlu1 %2233  ;;  %v2284_v48 = vsel %vm1351_vm11, %v2281_v45, %v2236_v39 }
 0x710   : > { %v2283_v49 = vsel %vm1351_vm11, %v2280_v46, %v2234_v40 }
 0x712   : > { %v2244_v41 = vpop.permute.xlu0 %2243 }
 0x713   : > { %v2242_v42 = vpop.permute.xlu1 %2241  ;;  %v2287_v50 = vsel %vm2285_vm6, %v2284_v48, %v2244_v41 }
 0x714   : > { %v2286_v51 = vsel %vm2285_vm6, %v2283_v49, %v2242_v42 }
 0x716   : > { %v2252_v43 = vpop.permute.xlu0 %2251 }
 0x717   : > { %v2250_v27 = vpop.permute.xlu1 %2249  ;;  %v2290_v52 = vsel %vm2288_vm5, %v2287_v50, %v2252_v43 }
 0x718   : > { %v2289_v37 = vsel %vm2288_vm5, %v2286_v51, %v2250_v27 }
 0x71a   : > { %v2260_v18 = vpop.permute.xlu0 %2259 }
 0x71b   : > { %v2258_v31 = vpop.permute.xlu1 %2257  ;;  %v2293_v53 = vsel %vm2291_vm13, %v2290_v52, %v2260_v18 }
 0x71c   : > { %v2292_v55 = vsel %vm2291_vm13, %v2289_v37, %v2258_v31 }
 0x71e   : > { %v2268_v35 = vpop.permute.xlu0 %2267 }
 0x71f   : > { %v2266_v38 = vpop.permute.xlu1 %2265  ;;  %v2295_v56 = vsel %vm641_vm0, %v2293_v53, %v2268_v35 }
 0x720   : > { %v2294_v58 = vsel %vm641_vm0, %v2292_v55, %v2266_v38 }
 0x722   : > { %v2276_v57 = vpop.permute.xlu0 %2275 }
 0x723   : > { %v2298_v33 = vsel %vm2296_vm14, %v2295_v56, %v2276_v57  ;;  %v2274_v59 = vpop.permute.xlu1 %2273 }
 0x724   : > { %2301 = vst.msk [vmem:[%s318_s23 + $0x8] sm:$0xff] %vm2299_vm1, %v2298_v33  ;;  %v2297_v60 = vsel %vm2296_vm14, %v2294_v58, %v2274_v59 }
 0x725   : > { %2300 = vst.msk [vmem:[%s318_s23] sm:$0xff] %vm2299_vm1, %v2297_v60 }
 0x726 PF: > { %s19_s27 = sadd.s32 1, %s2670_s27  }
 0x727   : > { %p16_p4 = scmp.ge.s32.totalorder %s19_s27, 4  }
 0x729   :  { %18 = sbr.rel (!%p16_p4) target bundleno = 1 (0x1), region = 94 }

</bundles_post_ra>
